<compile_context>
chip_gen: v7x
topology: tpu7x:2x2x1
jax: 0.10.0
libtpu: 0.0.40
codegen_flags: <defaults>
</compile_context>

<pallas_src>
from functools import partial

import jax
import jax.numpy as jnp
from jax import lax
from jax.experimental import pallas as pl
from jax.experimental.pallas import tpu as pltpu


def _attn_kernel(x_ref, g_ref, wqkv_ref, wout_ref, bout_ref, o_ref, ctx_ref, *,
                 heads, dim_head, batch, n_pix):
    """Single invocation over the whole (batch-folded) problem.

    x_ref:    (C, B*N)        pre-norm input (channels x batch*pixels), f32
    g_ref:    (C, 1)          LayerNorm gain, f32
    wqkv_ref: (3*hidden, C)   qkv 1x1-conv weight, bf16 (q rows pre-scaled)
    wout_ref: (C, hidden)     output 1x1-conv weight, bf16, lane-dense slab
    bout_ref: (C, 1)          output bias, f32
    o_ref:    (C, B*N)        output, f32 (lane-dense store)
    ctx_ref:  (hidden, B*N)   f32 VMEM scratch gathering all heads' contexts
    """
    hidden = heads * dim_head

    x = x_ref[...]                                       # (C, B*N) f32

    # --- LayerNorm over channels (torch: dim=1, unbiased=False, eps=1e-5) ---
    mean = jnp.mean(x, axis=0, keepdims=True)            # (1, B*N)
    xc = x - mean
    var = jnp.mean(xc * xc, axis=0, keepdims=True)
    xn = xc * lax.rsqrt(var + 1e-5) * g_ref[...]         # (C, B*N) f32

    # --- qkv projection: (3*hidden, C) @ (C, B*N), bf16 in / f32 accumulate ---
    qkv = jnp.dot(wqkv_ref[...], xn.astype(jnp.bfloat16),
                  preferred_element_type=jnp.float32)    # (3*hidden, B*N) f32
    qkv_b = qkv.astype(jnp.bfloat16)

    # One hoisted bf16 transpose of the full q block: (hidden, B*N) -> (B*N, hidden).
    q_all_t = qkv_b[:hidden, :].T                        # (B*N, hidden) bf16

    # --- per-(batch, head) attention; all slices are static.  Static unroll is
    #     fine at this size (see TODO above for the scaled-up version). ---
    for b in range(batch):
        c0 = b * n_pix
        for h in range(heads):
            lo = h * dim_head
            q_t = q_all_t[c0:c0 + n_pix, lo:lo + dim_head]                    # (N, d)
            k_h = qkv_b[hidden + lo:hidden + lo + dim_head, c0:c0 + n_pix]    # (d, N)
            v_h = qkv_b[2 * hidden + lo:2 * hidden + lo + dim_head,
                        c0:c0 + n_pix]                                        # (d, N)

            sim = jnp.dot(q_t, k_h, preferred_element_type=jnp.float32)       # (N, N)
            sim = sim - jnp.max(sim, axis=-1, keepdims=True)
            p = jnp.exp(sim)
            attn = p * pl.reciprocal(jnp.sum(p, axis=-1, keepdims=True), approx=True)

            # ctx_h^T = v_h @ attn^T -> (d, N), via trans-B dot_general.
            out_t = lax.dot_general(v_h, attn.astype(jnp.bfloat16),
                                    (((1,), (1,)), ((), ())),
                                    preferred_element_type=jnp.float32)       # (d, N)
            ctx_ref[lo:lo + dim_head, c0:c0 + n_pix] = out_t

    # --- single batched output projection: (C, hidden) @ (hidden, B*N), K=hidden ---
    y = jnp.dot(wout_ref[...], ctx_ref[...].astype(jnp.bfloat16),
                preferred_element_type=jnp.float32)       # (C, B*N) f32
    o_ref[...] = y + bout_ref[...]                        # lane-dense store


def attention_forward(x, params, *, heads, dim_head):
    """x: (B, C, H, W) float32, NCHW (PyTorch convention)."""
    B, C, H, W = x.shape
    N = H * W
    hidden = heads * dim_head
    scale = dim_head ** -0.5

    # (B, C, H, W) -> (C, B*N): fold batch into the lane axis (wrapper-side layout).
    x_cn = jnp.transpose(x.reshape(B, C, N), (1, 0, 2)).reshape(C, B * N)

    g = params["g"].reshape(C, 1).astype(jnp.float32)
    bout = params["bout"].reshape(C, 1).astype(jnp.float32)

    # Fold the q scale into the qkv weight rows; bf16 weights for the MXU.
    wqkv = params["wqkv"].astype(jnp.float32).at[:hidden].multiply(scale)
    wqkv_b = wqkv.astype(jnp.bfloat16)                    # (3*hidden, C)
    wout_b = params["wout"].astype(jnp.bfloat16)          # (C, hidden) lane-dense slab

    out = pl.pallas_call(
        partial(_attn_kernel, heads=heads, dim_head=dim_head, batch=B, n_pix=N),
        out_shape=jax.ShapeDtypeStruct((C, B * N), jnp.float32),
        grid_spec=pltpu.PrefetchScalarGridSpec(
            num_scalar_prefetch=0,
            grid=(1,),
            in_specs=[
                pl.BlockSpec((C, B * N), lambda i: (0, 0)),
                pl.BlockSpec((C, 1), lambda i: (0, 0)),
                pl.BlockSpec((3 * hidden, C), lambda i: (0, 0)),
                pl.BlockSpec((C, hidden), lambda i: (0, 0)),
                pl.BlockSpec((C, 1), lambda i: (0, 0)),
            ],
            out_specs=pl.BlockSpec((C, B * N), lambda i: (0, 0)),
            scratch_shapes=[pltpu.VMEM((hidden, B * N), jnp.float32)],
        ),
        compiler_params=pltpu.CompilerParams(dimension_semantics=("arbitrary",)),
    )(x_cn, g, wqkv_b, wout_b, bout)

    # (C, B*N) -> (B, C, H, W): wrapper-side re-layout.
    return jnp.transpose(out.reshape(C, B, N), (1, 0, 2)).reshape(B, C, H, W)


def attention_reference(x, params, *, heads, dim_head):
    """Pure-JAX f32 reference mirroring the PyTorch forward (for validation)."""
    B, C, H, W = x.shape
    N = H * W
    hidden = heads * dim_head
    scale = dim_head ** -0.5

    mean = jnp.mean(x, axis=1, keepdims=True)
    var = jnp.mean((x - mean) ** 2, axis=1, keepdims=True)
    xn = (x - mean) * lax.rsqrt(var + 1e-5) * params["g"].reshape(1, C, 1, 1)

    qkv = jnp.einsum("oc,bchw->bohw", params["wqkv"], xn)           # (B, 3*hidden, H, W)
    q, k, v = jnp.split(qkv, 3, axis=1)

    def split_heads(t):                                             # b (h c) x y -> b h c (xy)
        return t.reshape(B, heads, dim_head, N)

    q, k, v = map(split_heads, (q, k, v))
    q = q * scale
    sim = jnp.einsum("bhdi,bhdj->bhij", q, k)
    attn = jax.nn.softmax(sim, axis=-1)
    out = jnp.einsum("bhij,bhdj->bhid", attn, v)                    # (B, h, N, d)
    out = jnp.transpose(out, (0, 1, 3, 2)).reshape(B, hidden, H, W) # b (h d) x y
    y = jnp.einsum("oc,bchw->bohw", params["wout"], out) + params["bout"].reshape(1, C, 1, 1)
    return y


if __name__ == "__main__":
    # Module config: Attention(dim=32, heads=4, dim_head=32)
    dim, heads, dim_head = 32, 4, 32
    hidden = heads * dim_head
    B, H, W = 2, 8, 8

    key = jax.random.PRNGKey(0)
    kx, kq, ko, kb = jax.random.split(key, 4)

    x = jax.random.normal(kx, (B, dim, H, W), dtype=jnp.float32)

    # Deterministic synthetic parameters (shapes follow nn.Conv2d 1x1 weights).
    params = {
        "g": jnp.ones((dim,), jnp.float32),                                 # LayerNorm gain
        "wqkv": 0.05 * jax.random.normal(kq, (3 * hidden, dim), jnp.float32),
        "wout": 0.05 * jax.random.normal(ko, (dim, hidden), jnp.float32),
        "bout": 0.01 * jax.random.normal(kb, (dim,), jnp.float32),
    }

    y = attention_forward(x, params, heads=heads, dim_head=dim_head)
    y = jax.block_until_ready(y)

    y_ref = attention_reference(x, params, heads=heads, dim_head=dim_head)
    assert y.shape == (B, dim, H, W)
    # bf16 MXU operands + approx reciprocal -> looser tolerance than pure-f32.
    assert jnp.allclose(y, y_ref, atol=2e-2, rtol=2e-2), "mismatch vs reference"

    print("KERNEL_OK")
</pallas_src>

<mosaic_0001>
module attributes {stable_mosaic.version = 11 : i64} {
  func.func @_attn_kernel(%arg0: i32, %arg1: memref<32x128xf32, #tpu.memory_space<vmem>>, %arg2: memref<32x1xf32, #tpu.memory_space<vmem>>, %arg3: memref<384x32xbf16, #tpu.memory_space<vmem>>, %arg4: memref<32x128xbf16, #tpu.memory_space<vmem>>, %arg5: memref<32x1xf32, #tpu.memory_space<vmem>>, %arg6: memref<32x128xf32, #tpu.memory_space<vmem>>, %arg7: memref<128x128xf32, #tpu.memory_space<vmem>>) attributes {dimension_semantics = [#tpu.dimension_semantics<arbitrary>], iteration_bounds = array<i64: 1>, scalar_prefetch = 0 : i64, scratch_operands = 1 : i64, tpu.core_type = #tpu.core_type<tc>, window_params = [{pipeline_mode = #tpu.pipeline_mode<synchronous>, transform_indices = @transform_0, window_bounds = array<i64: 32, 128>}, {pipeline_mode = #tpu.pipeline_mode<synchronous>, transform_indices = @transform_1, window_bounds = array<i64: 32, 1>}, {pipeline_mode = #tpu.pipeline_mode<synchronous>, transform_indices = @transform_2, window_bounds = array<i64: 384, 32>}, {pipeline_mode = #tpu.pipeline_mode<synchronous>, transform_indices = @transform_3, window_bounds = array<i64: 32, 128>}, {pipeline_mode = #tpu.pipeline_mode<synchronous>, transform_indices = @transform_4, window_bounds = array<i64: 32, 1>}, {pipeline_mode = #tpu.pipeline_mode<synchronous>, transform_indices = @transform_5, window_bounds = array<i64: 32, 128>}]} {
    %c0 = arith.constant 0 : index
    %c0_0 = arith.constant 0 : index
    %0 = vector.load %arg1[%c0, %c0_0] : memref<32x128xf32, #tpu.memory_space<vmem>>, vector<32x128xf32>
    %cst = arith.constant dense<0.000000e+00> : vector<128xf32>
    %1 = vector.multi_reduction <add>, %0, %cst [0] : vector<32x128xf32> to vector<128xf32>
    %2 = vector.shape_cast %1 : vector<128xf32> to vector<1x128xf32>
    %cst_1 = arith.constant 3.200000e+01 : f32
    %3 = vector.broadcast %cst_1 : f32 to vector<1x128xf32>
    %4 = arith.divf %2, %3 : vector<1x128xf32>
    %5 = vector.broadcast %4 : vector<1x128xf32> to vector<32x128xf32>
    %6 = arith.subf %0, %5 : vector<32x128xf32>
    %7 = arith.mulf %6, %6 : vector<32x128xf32>
    %cst_2 = arith.constant dense<0.000000e+00> : vector<128xf32>
    %8 = vector.multi_reduction <add>, %7, %cst_2 [0] : vector<32x128xf32> to vector<128xf32>
    %9 = vector.shape_cast %8 : vector<128xf32> to vector<1x128xf32>
    %cst_3 = arith.constant 3.200000e+01 : f32
    %10 = vector.broadcast %cst_3 : f32 to vector<1x128xf32>
    %11 = arith.divf %9, %10 : vector<1x128xf32>
    %cst_4 = arith.constant 9.99999974E-6 : f32
    %12 = vector.broadcast %cst_4 : f32 to vector<1x128xf32>
    %13 = arith.addf %11, %12 : vector<1x128xf32>
    %14 = math.rsqrt %13 : vector<1x128xf32>
    %15 = vector.broadcast %14 : vector<1x128xf32> to vector<32x128xf32>
    %16 = arith.mulf %6, %15 : vector<32x128xf32>
    %c0_5 = arith.constant 0 : index
    %c0_6 = arith.constant 0 : index
    %17 = vector.load %arg2[%c0_5, %c0_6] : memref<32x1xf32, #tpu.memory_space<vmem>>, vector<32x1xf32>
    %18 = vector.broadcast %17 : vector<32x1xf32> to vector<32x128xf32>
    %19 = arith.mulf %16, %18 : vector<32x128xf32>
    %c0_7 = arith.constant 0 : index
    %c0_8 = arith.constant 0 : index
    %20 = vector.load %arg3[%c0_7, %c0_8] : memref<384x32xbf16, #tpu.memory_space<vmem>>, vector<384x32xbf16>
    %21 = arith.truncf %19 : vector<32x128xf32> to vector<32x128xbf16>
    %cst_9 = arith.constant dense<0.000000e+00> : vector<384x128xf32>
    %22 = tpu.matmul %20, %21, %cst_9 {dimension_numbers = #tpu.dot_dimension_numbers<[1], [0], [0], [1], [0, 0, 1, 1], [], []>} : vector<384x32xbf16>, vector<32x128xbf16>, vector<384x128xf32> -> vector<384x128xf32>
    %23 = arith.truncf %22 : vector<384x128xf32> to vector<384x128xbf16>
    %24 = vector.extract_strided_slice %23 {offsets = [0, 0], sizes = [128, 128], strides = [1, 1]} : vector<384x128xbf16> to vector<128x128xbf16>
    %25 = tpu.transpose %24, [1, 0] : vector<128x128xbf16> -> vector<128x128xbf16>
    %26 = vector.extract_strided_slice %25 {offsets = [0, 0], sizes = [64, 32], strides = [1, 1]} : vector<128x128xbf16> to vector<64x32xbf16>
    %27 = vector.extract_strided_slice %23 {offsets = [128, 0], sizes = [32, 64], strides = [1, 1]} : vector<384x128xbf16> to vector<32x64xbf16>
    %28 = vector.extract_strided_slice %23 {offsets = [256, 0], sizes = [32, 64], strides = [1, 1]} : vector<384x128xbf16> to vector<32x64xbf16>
    %cst_10 = arith.constant dense<0.000000e+00> : vector<64x64xf32>
    %29 = tpu.matmul %26, %27, %cst_10 {dimension_numbers = #tpu.dot_dimension_numbers<[1], [0], [0], [1], [0, 0, 1, 1], [], []>} : vector<64x32xbf16>, vector<32x64xbf16>, vector<64x64xf32> -> vector<64x64xf32>
    %cst_11 = arith.constant dense<0xFF800000> : vector<64xf32>
    %30 = vector.multi_reduction <maximumf>, %29, %cst_11 [1] : vector<64x64xf32> to vector<64xf32>
    %31 = vector.shape_cast %30 : vector<64xf32> to vector<64x1xf32>
    %32 = vector.broadcast %31 : vector<64x1xf32> to vector<64x64xf32>
    %33 = arith.subf %29, %32 : vector<64x64xf32>
    %34 = math.exp %33 : vector<64x64xf32>
    %cst_12 = arith.constant dense<0.000000e+00> : vector<64xf32>
    %35 = vector.multi_reduction <add>, %34, %cst_12 [1] : vector<64x64xf32> to vector<64xf32>
    %36 = vector.shape_cast %35 : vector<64xf32> to vector<64x1xf32>
    %37 = tpu.reciprocal %36 {approx = true} : vector<64x1xf32> -> vector<64x1xf32>
    %38 = vector.broadcast %37 : vector<64x1xf32> to vector<64x64xf32>
    %39 = arith.mulf %34, %38 : vector<64x64xf32>
    %40 = arith.truncf %39 : vector<64x64xf32> to vector<64x64xbf16>
    %cst_13 = arith.constant dense<0.000000e+00> : vector<32x64xf32>
    %41 = tpu.matmul %28, %40, %cst_13 {dimension_numbers = #tpu.dot_dimension_numbers<[1], [1], [0], [0], [0, 0, 1, 0], [], []>} : vector<32x64xbf16>, vector<64x64xbf16>, vector<32x64xf32> -> vector<32x64xf32>
    %c0_14 = arith.constant 0 : index
    %c0_15 = arith.constant 0 : index
    %42 = vector.load %arg7[%c0_14, %c0_15] : memref<128x128xf32, #tpu.memory_space<vmem>>, vector<32x64xf32>
    tpu.vector_store %arg7[%c0_14, %c0_15], %41 {strides = array<i32>} : memref<128x128xf32, #tpu.memory_space<vmem>>, vector<32x64xf32>,
    %43 = vector.extract_strided_slice %25 {offsets = [0, 32], sizes = [64, 32], strides = [1, 1]} : vector<128x128xbf16> to vector<64x32xbf16>
    %44 = vector.extract_strided_slice %23 {offsets = [160, 0], sizes = [32, 64], strides = [1, 1]} : vector<384x128xbf16> to vector<32x64xbf16>
    %45 = vector.extract_strided_slice %23 {offsets = [288, 0], sizes = [32, 64], strides = [1, 1]} : vector<384x128xbf16> to vector<32x64xbf16>
    %cst_16 = arith.constant dense<0.000000e+00> : vector<64x64xf32>
    %46 = tpu.matmul %43, %44, %cst_16 {dimension_numbers = #tpu.dot_dimension_numbers<[1], [0], [0], [1], [0, 0, 1, 1], [], []>} : vector<64x32xbf16>, vector<32x64xbf16>, vector<64x64xf32> -> vector<64x64xf32>
    %cst_17 = arith.constant dense<0xFF800000> : vector<64xf32>
    %47 = vector.multi_reduction <maximumf>, %46, %cst_17 [1] : vector<64x64xf32> to vector<64xf32>
    %48 = vector.shape_cast %47 : vector<64xf32> to vector<64x1xf32>
    %49 = vector.broadcast %48 : vector<64x1xf32> to vector<64x64xf32>
    %50 = arith.subf %46, %49 : vector<64x64xf32>
    %51 = math.exp %50 : vector<64x64xf32>
    %cst_18 = arith.constant dense<0.000000e+00> : vector<64xf32>
    %52 = vector.multi_reduction <add>, %51, %cst_18 [1] : vector<64x64xf32> to vector<64xf32>
    %53 = vector.shape_cast %52 : vector<64xf32> to vector<64x1xf32>
    %54 = tpu.reciprocal %53 {approx = true} : vector<64x1xf32> -> vector<64x1xf32>
    %55 = vector.broadcast %54 : vector<64x1xf32> to vector<64x64xf32>
    %56 = arith.mulf %51, %55 : vector<64x64xf32>
    %57 = arith.truncf %56 : vector<64x64xf32> to vector<64x64xbf16>
    %cst_19 = arith.constant dense<0.000000e+00> : vector<32x64xf32>
    %58 = tpu.matmul %45, %57, %cst_19 {dimension_numbers = #tpu.dot_dimension_numbers<[1], [1], [0], [0], [0, 0, 1, 0], [], []>} : vector<32x64xbf16>, vector<64x64xbf16>, vector<32x64xf32> -> vector<32x64xf32>
    %c32 = arith.constant 32 : index
    %c0_20 = arith.constant 0 : index
    %59 = vector.load %arg7[%c32, %c0_20] : memref<128x128xf32, #tpu.memory_space<vmem>>, vector<32x64xf32>
    tpu.vector_store %arg7[%c32, %c0_20], %58 {strides = array<i32>} : memref<128x128xf32, #tpu.memory_space<vmem>>, vector<32x64xf32>,
    %60 = vector.extract_strided_slice %25 {offsets = [0, 64], sizes = [64, 32], strides = [1, 1]} : vector<128x128xbf16> to vector<64x32xbf16>
    %61 = vector.extract_strided_slice %23 {offsets = [192, 0], sizes = [32, 64], strides = [1, 1]} : vector<384x128xbf16> to vector<32x64xbf16>
    %62 = vector.extract_strided_slice %23 {offsets = [320, 0], sizes = [32, 64], strides = [1, 1]} : vector<384x128xbf16> to vector<32x64xbf16>
    %cst_21 = arith.constant dense<0.000000e+00> : vector<64x64xf32>
    %63 = tpu.matmul %60, %61, %cst_21 {dimension_numbers = #tpu.dot_dimension_numbers<[1], [0], [0], [1], [0, 0, 1, 1], [], []>} : vector<64x32xbf16>, vector<32x64xbf16>, vector<64x64xf32> -> vector<64x64xf32>
    %cst_22 = arith.constant dense<0xFF800000> : vector<64xf32>
    %64 = vector.multi_reduction <maximumf>, %63, %cst_22 [1] : vector<64x64xf32> to vector<64xf32>
    %65 = vector.shape_cast %64 : vector<64xf32> to vector<64x1xf32>
    %66 = vector.broadcast %65 : vector<64x1xf32> to vector<64x64xf32>
    %67 = arith.subf %63, %66 : vector<64x64xf32>
    %68 = math.exp %67 : vector<64x64xf32>
    %cst_23 = arith.constant dense<0.000000e+00> : vector<64xf32>
    %69 = vector.multi_reduction <add>, %68, %cst_23 [1] : vector<64x64xf32> to vector<64xf32>
    %70 = vector.shape_cast %69 : vector<64xf32> to vector<64x1xf32>
    %71 = tpu.reciprocal %70 {approx = true} : vector<64x1xf32> -> vector<64x1xf32>
    %72 = vector.broadcast %71 : vector<64x1xf32> to vector<64x64xf32>
    %73 = arith.mulf %68, %72 : vector<64x64xf32>
    %74 = arith.truncf %73 : vector<64x64xf32> to vector<64x64xbf16>
    %cst_24 = arith.constant dense<0.000000e+00> : vector<32x64xf32>
    %75 = tpu.matmul %62, %74, %cst_24 {dimension_numbers = #tpu.dot_dimension_numbers<[1], [1], [0], [0], [0, 0, 1, 0], [], []>} : vector<32x64xbf16>, vector<64x64xbf16>, vector<32x64xf32> -> vector<32x64xf32>
    %c64 = arith.constant 64 : index
    %c0_25 = arith.constant 0 : index
    %76 = vector.load %arg7[%c64, %c0_25] : memref<128x128xf32, #tpu.memory_space<vmem>>, vector<32x64xf32>
    tpu.vector_store %arg7[%c64, %c0_25], %75 {strides = array<i32>} : memref<128x128xf32, #tpu.memory_space<vmem>>, vector<32x64xf32>,
    %77 = vector.extract_strided_slice %25 {offsets = [0, 96], sizes = [64, 32], strides = [1, 1]} : vector<128x128xbf16> to vector<64x32xbf16>
    %78 = vector.extract_strided_slice %23 {offsets = [224, 0], sizes = [32, 64], strides = [1, 1]} : vector<384x128xbf16> to vector<32x64xbf16>
    %79 = vector.extract_strided_slice %23 {offsets = [352, 0], sizes = [32, 64], strides = [1, 1]} : vector<384x128xbf16> to vector<32x64xbf16>
    %cst_26 = arith.constant dense<0.000000e+00> : vector<64x64xf32>
    %80 = tpu.matmul %77, %78, %cst_26 {dimension_numbers = #tpu.dot_dimension_numbers<[1], [0], [0], [1], [0, 0, 1, 1], [], []>} : vector<64x32xbf16>, vector<32x64xbf16>, vector<64x64xf32> -> vector<64x64xf32>
    %cst_27 = arith.constant dense<0xFF800000> : vector<64xf32>
    %81 = vector.multi_reduction <maximumf>, %80, %cst_27 [1] : vector<64x64xf32> to vector<64xf32>
    %82 = vector.shape_cast %81 : vector<64xf32> to vector<64x1xf32>
    %83 = vector.broadcast %82 : vector<64x1xf32> to vector<64x64xf32>
    %84 = arith.subf %80, %83 : vector<64x64xf32>
    %85 = math.exp %84 : vector<64x64xf32>
    %cst_28 = arith.constant dense<0.000000e+00> : vector<64xf32>
    %86 = vector.multi_reduction <add>, %85, %cst_28 [1] : vector<64x64xf32> to vector<64xf32>
    %87 = vector.shape_cast %86 : vector<64xf32> to vector<64x1xf32>
    %88 = tpu.reciprocal %87 {approx = true} : vector<64x1xf32> -> vector<64x1xf32>
    %89 = vector.broadcast %88 : vector<64x1xf32> to vector<64x64xf32>
    %90 = arith.mulf %85, %89 : vector<64x64xf32>
    %91 = arith.truncf %90 : vector<64x64xf32> to vector<64x64xbf16>
    %cst_29 = arith.constant dense<0.000000e+00> : vector<32x64xf32>
    %92 = tpu.matmul %79, %91, %cst_29 {dimension_numbers = #tpu.dot_dimension_numbers<[1], [1], [0], [0], [0, 0, 1, 0], [], []>} : vector<32x64xbf16>, vector<64x64xbf16>, vector<32x64xf32> -> vector<32x64xf32>
    %c96 = arith.constant 96 : index
    %c0_30 = arith.constant 0 : index
    %93 = vector.load %arg7[%c96, %c0_30] : memref<128x128xf32, #tpu.memory_space<vmem>>, vector<32x64xf32>
    tpu.vector_store %arg7[%c96, %c0_30], %92 {strides = array<i32>} : memref<128x128xf32, #tpu.memory_space<vmem>>, vector<32x64xf32>,
    %94 = vector.extract_strided_slice %25 {offsets = [64, 0], sizes = [64, 32], strides = [1, 1]} : vector<128x128xbf16> to vector<64x32xbf16>
    %95 = vector.extract_strided_slice %23 {offsets = [128, 64], sizes = [32, 64], strides = [1, 1]} : vector<384x128xbf16> to vector<32x64xbf16>
    %96 = vector.extract_strided_slice %23 {offsets = [256, 64], sizes = [32, 64], strides = [1, 1]} : vector<384x128xbf16> to vector<32x64xbf16>
    %cst_31 = arith.constant dense<0.000000e+00> : vector<64x64xf32>
    %97 = tpu.matmul %94, %95, %cst_31 {dimension_numbers = #tpu.dot_dimension_numbers<[1], [0], [0], [1], [0, 0, 1, 1], [], []>} : vector<64x32xbf16>, vector<32x64xbf16>, vector<64x64xf32> -> vector<64x64xf32>
    %cst_32 = arith.constant dense<0xFF800000> : vector<64xf32>
    %98 = vector.multi_reduction <maximumf>, %97, %cst_32 [1] : vector<64x64xf32> to vector<64xf32>
    %99 = vector.shape_cast %98 : vector<64xf32> to vector<64x1xf32>
    %100 = vector.broadcast %99 : vector<64x1xf32> to vector<64x64xf32>
    %101 = arith.subf %97, %100 : vector<64x64xf32>
    %102 = math.exp %101 : vector<64x64xf32>
    %cst_33 = arith.constant dense<0.000000e+00> : vector<64xf32>
    %103 = vector.multi_reduction <add>, %102, %cst_33 [1] : vector<64x64xf32> to vector<64xf32>
    %104 = vector.shape_cast %103 : vector<64xf32> to vector<64x1xf32>
    %105 = tpu.reciprocal %104 {approx = true} : vector<64x1xf32> -> vector<64x1xf32>
    %106 = vector.broadcast %105 : vector<64x1xf32> to vector<64x64xf32>
    %107 = arith.mulf %102, %106 : vector<64x64xf32>
    %108 = arith.truncf %107 : vector<64x64xf32> to vector<64x64xbf16>
    %cst_34 = arith.constant dense<0.000000e+00> : vector<32x64xf32>
    %109 = tpu.matmul %96, %108, %cst_34 {dimension_numbers = #tpu.dot_dimension_numbers<[1], [1], [0], [0], [0, 0, 1, 0], [], []>} : vector<32x64xbf16>, vector<64x64xbf16>, vector<32x64xf32> -> vector<32x64xf32>
    %c0_35 = arith.constant 0 : index
    %c64_36 = arith.constant 64 : index
    %110 = vector.load %arg7[%c0_35, %c64_36] : memref<128x128xf32, #tpu.memory_space<vmem>>, vector<32x64xf32>
    tpu.vector_store %arg7[%c0_35, %c64_36], %109 {strides = array<i32>} : memref<128x128xf32, #tpu.memory_space<vmem>>, vector<32x64xf32>,
    %111 = vector.extract_strided_slice %25 {offsets = [64, 32], sizes = [64, 32], strides = [1, 1]} : vector<128x128xbf16> to vector<64x32xbf16>
    %112 = vector.extract_strided_slice %23 {offsets = [160, 64], sizes = [32, 64], strides = [1, 1]} : vector<384x128xbf16> to vector<32x64xbf16>
    %113 = vector.extract_strided_slice %23 {offsets = [288, 64], sizes = [32, 64], strides = [1, 1]} : vector<384x128xbf16> to vector<32x64xbf16>
    %cst_37 = arith.constant dense<0.000000e+00> : vector<64x64xf32>
    %114 = tpu.matmul %111, %112, %cst_37 {dimension_numbers = #tpu.dot_dimension_numbers<[1], [0], [0], [1], [0, 0, 1, 1], [], []>} : vector<64x32xbf16>, vector<32x64xbf16>, vector<64x64xf32> -> vector<64x64xf32>
    %cst_38 = arith.constant dense<0xFF800000> : vector<64xf32>
    %115 = vector.multi_reduction <maximumf>, %114, %cst_38 [1] : vector<64x64xf32> to vector<64xf32>
    %116 = vector.shape_cast %115 : vector<64xf32> to vector<64x1xf32>
    %117 = vector.broadcast %116 : vector<64x1xf32> to vector<64x64xf32>
    %118 = arith.subf %114, %117 : vector<64x64xf32>
    %119 = math.exp %118 : vector<64x64xf32>
    %cst_39 = arith.constant dense<0.000000e+00> : vector<64xf32>
    %120 = vector.multi_reduction <add>, %119, %cst_39 [1] : vector<64x64xf32> to vector<64xf32>
    %121 = vector.shape_cast %120 : vector<64xf32> to vector<64x1xf32>
    %122 = tpu.reciprocal %121 {approx = true} : vector<64x1xf32> -> vector<64x1xf32>
    %123 = vector.broadcast %122 : vector<64x1xf32> to vector<64x64xf32>
    %124 = arith.mulf %119, %123 : vector<64x64xf32>
    %125 = arith.truncf %124 : vector<64x64xf32> to vector<64x64xbf16>
    %cst_40 = arith.constant dense<0.000000e+00> : vector<32x64xf32>
    %126 = tpu.matmul %113, %125, %cst_40 {dimension_numbers = #tpu.dot_dimension_numbers<[1], [1], [0], [0], [0, 0, 1, 0], [], []>} : vector<32x64xbf16>, vector<64x64xbf16>, vector<32x64xf32> -> vector<32x64xf32>
    %c32_41 = arith.constant 32 : index
    %c64_42 = arith.constant 64 : index
    %127 = vector.load %arg7[%c32_41, %c64_42] : memref<128x128xf32, #tpu.memory_space<vmem>>, vector<32x64xf32>
    tpu.vector_store %arg7[%c32_41, %c64_42], %126 {strides = array<i32>} : memref<128x128xf32, #tpu.memory_space<vmem>>, vector<32x64xf32>,
    %128 = vector.extract_strided_slice %25 {offsets = [64, 64], sizes = [64, 32], strides = [1, 1]} : vector<128x128xbf16> to vector<64x32xbf16>
    %129 = vector.extract_strided_slice %23 {offsets = [192, 64], sizes = [32, 64], strides = [1, 1]} : vector<384x128xbf16> to vector<32x64xbf16>
    %130 = vector.extract_strided_slice %23 {offsets = [320, 64], sizes = [32, 64], strides = [1, 1]} : vector<384x128xbf16> to vector<32x64xbf16>
    %cst_43 = arith.constant dense<0.000000e+00> : vector<64x64xf32>
    %131 = tpu.matmul %128, %129, %cst_43 {dimension_numbers = #tpu.dot_dimension_numbers<[1], [0], [0], [1], [0, 0, 1, 1], [], []>} : vector<64x32xbf16>, vector<32x64xbf16>, vector<64x64xf32> -> vector<64x64xf32>
    %cst_44 = arith.constant dense<0xFF800000> : vector<64xf32>
    %132 = vector.multi_reduction <maximumf>, %131, %cst_44 [1] : vector<64x64xf32> to vector<64xf32>
    %133 = vector.shape_cast %132 : vector<64xf32> to vector<64x1xf32>
    %134 = vector.broadcast %133 : vector<64x1xf32> to vector<64x64xf32>
    %135 = arith.subf %131, %134 : vector<64x64xf32>
    %136 = math.exp %135 : vector<64x64xf32>
    %cst_45 = arith.constant dense<0.000000e+00> : vector<64xf32>
    %137 = vector.multi_reduction <add>, %136, %cst_45 [1] : vector<64x64xf32> to vector<64xf32>
    %138 = vector.shape_cast %137 : vector<64xf32> to vector<64x1xf32>
    %139 = tpu.reciprocal %138 {approx = true} : vector<64x1xf32> -> vector<64x1xf32>
    %140 = vector.broadcast %139 : vector<64x1xf32> to vector<64x64xf32>
    %141 = arith.mulf %136, %140 : vector<64x64xf32>
    %142 = arith.truncf %141 : vector<64x64xf32> to vector<64x64xbf16>
    %cst_46 = arith.constant dense<0.000000e+00> : vector<32x64xf32>
    %143 = tpu.matmul %130, %142, %cst_46 {dimension_numbers = #tpu.dot_dimension_numbers<[1], [1], [0], [0], [0, 0, 1, 0], [], []>} : vector<32x64xbf16>, vector<64x64xbf16>, vector<32x64xf32> -> vector<32x64xf32>
    %c64_47 = arith.constant 64 : index
    %c64_48 = arith.constant 64 : index
    %144 = vector.load %arg7[%c64_47, %c64_48] : memref<128x128xf32, #tpu.memory_space<vmem>>, vector<32x64xf32>
    tpu.vector_store %arg7[%c64_47, %c64_48], %143 {strides = array<i32>} : memref<128x128xf32, #tpu.memory_space<vmem>>, vector<32x64xf32>,
    %145 = vector.extract_strided_slice %25 {offsets = [64, 96], sizes = [64, 32], strides = [1, 1]} : vector<128x128xbf16> to vector<64x32xbf16>
    %146 = vector.extract_strided_slice %23 {offsets = [224, 64], sizes = [32, 64], strides = [1, 1]} : vector<384x128xbf16> to vector<32x64xbf16>
    %147 = vector.extract_strided_slice %23 {offsets = [352, 64], sizes = [32, 64], strides = [1, 1]} : vector<384x128xbf16> to vector<32x64xbf16>
    %cst_49 = arith.constant dense<0.000000e+00> : vector<64x64xf32>
    %148 = tpu.matmul %145, %146, %cst_49 {dimension_numbers = #tpu.dot_dimension_numbers<[1], [0], [0], [1], [0, 0, 1, 1], [], []>} : vector<64x32xbf16>, vector<32x64xbf16>, vector<64x64xf32> -> vector<64x64xf32>
    %cst_50 = arith.constant dense<0xFF800000> : vector<64xf32>
    %149 = vector.multi_reduction <maximumf>, %148, %cst_50 [1] : vector<64x64xf32> to vector<64xf32>
    %150 = vector.shape_cast %149 : vector<64xf32> to vector<64x1xf32>
    %151 = vector.broadcast %150 : vector<64x1xf32> to vector<64x64xf32>
    %152 = arith.subf %148, %151 : vector<64x64xf32>
    %153 = math.exp %152 : vector<64x64xf32>
    %cst_51 = arith.constant dense<0.000000e+00> : vector<64xf32>
    %154 = vector.multi_reduction <add>, %153, %cst_51 [1] : vector<64x64xf32> to vector<64xf32>
    %155 = vector.shape_cast %154 : vector<64xf32> to vector<64x1xf32>
    %156 = tpu.reciprocal %155 {approx = true} : vector<64x1xf32> -> vector<64x1xf32>
    %157 = vector.broadcast %156 : vector<64x1xf32> to vector<64x64xf32>
    %158 = arith.mulf %153, %157 : vector<64x64xf32>
    %159 = arith.truncf %158 : vector<64x64xf32> to vector<64x64xbf16>
    %cst_52 = arith.constant dense<0.000000e+00> : vector<32x64xf32>
    %160 = tpu.matmul %147, %159, %cst_52 {dimension_numbers = #tpu.dot_dimension_numbers<[1], [1], [0], [0], [0, 0, 1, 0], [], []>} : vector<32x64xbf16>, vector<64x64xbf16>, vector<32x64xf32> -> vector<32x64xf32>
    %c96_53 = arith.constant 96 : index
    %c64_54 = arith.constant 64 : index
    %161 = vector.load %arg7[%c96_53, %c64_54] : memref<128x128xf32, #tpu.memory_space<vmem>>, vector<32x64xf32>
    tpu.vector_store %arg7[%c96_53, %c64_54], %160 {strides = array<i32>} : memref<128x128xf32, #tpu.memory_space<vmem>>, vector<32x64xf32>,
    %c0_55 = arith.constant 0 : index
    %c0_56 = arith.constant 0 : index
    %162 = vector.load %arg4[%c0_55, %c0_56] : memref<32x128xbf16, #tpu.memory_space<vmem>>, vector<32x128xbf16>
    %c0_57 = arith.constant 0 : index
    %c0_58 = arith.constant 0 : index
    %163 = vector.load %arg7[%c0_57, %c0_58] : memref<128x128xf32, #tpu.memory_space<vmem>>, vector<128x128xf32>
    %164 = arith.truncf %163 : vector<128x128xf32> to vector<128x128xbf16>
    %cst_59 = arith.constant dense<0.000000e+00> : vector<32x128xf32>
    %165 = tpu.matmul %162, %164, %cst_59 {dimension_numbers = #tpu.dot_dimension_numbers<[1], [0], [0], [1], [0, 0, 1, 1], [], []>} : vector<32x128xbf16>, vector<128x128xbf16>, vector<32x128xf32> -> vector<32x128xf32>
    %c0_60 = arith.constant 0 : index
    %c0_61 = arith.constant 0 : index
    %166 = vector.load %arg5[%c0_60, %c0_61] : memref<32x1xf32, #tpu.memory_space<vmem>>, vector<32x1xf32>
    %167 = vector.broadcast %166 : vector<32x1xf32> to vector<32x128xf32>
    %168 = arith.addf %165, %167 : vector<32x128xf32>
    %c0_62 = arith.constant 0 : index
    %c0_63 = arith.constant 0 : index
    %169 = vector.load %arg6[%c0_62, %c0_63] : memref<32x128xf32, #tpu.memory_space<vmem>>, vector<32x128xf32>
    tpu.vector_store %arg6[%c0_62, %c0_63], %168 {strides = array<i32>} : memref<32x128xf32, #tpu.memory_space<vmem>>, vector<32x128xf32>,
    return
  }
  func.func @transform_0(%arg0: i32) -> (i32, i32) {
    %c0_i32 = arith.constant 0 : i32
    %c0_i32_0 = arith.constant 0 : i32
    %c0_i32_1 = arith.constant 0 : i32
    return %c0_i32, %c0_i32_0 : i32, i32
  }
  func.func @transform_1(%arg0: i32) -> (i32, i32) {
    %c0_i32 = arith.constant 0 : i32
    %c0_i32_0 = arith.constant 0 : i32
    %c0_i32_1 = arith.constant 0 : i32
    return %c0_i32, %c0_i32_0 : i32, i32
  }
  func.func @transform_2(%arg0: i32) -> (i32, i32) {
    %c0_i32 = arith.constant 0 : i32
    %c0_i32_0 = arith.constant 0 : i32
    %c0_i32_1 = arith.constant 0 : i32
    return %c0_i32, %c0_i32_0 : i32, i32
  }
  func.func @transform_3(%arg0: i32) -> (i32, i32) {
    %c0_i32 = arith.constant 0 : i32
    %c0_i32_0 = arith.constant 0 : i32
    %c0_i32_1 = arith.constant 0 : i32
    return %c0_i32, %c0_i32_0 : i32, i32
  }
  func.func @transform_4(%arg0: i32) -> (i32, i32) {
    %c0_i32 = arith.constant 0 : i32
    %c0_i32_0 = arith.constant 0 : i32
    %c0_i32_1 = arith.constant 0 : i32
    return %c0_i32, %c0_i32_0 : i32, i32
  }
  func.func @transform_5(%arg0: i32) -> (i32, i32) {
    %c0_i32 = arith.constant 0 : i32
    %c0_i32_0 = arith.constant 0 : i32
    %c0_i32_1 = arith.constant 0 : i32
    return %c0_i32, %c0_i32_0 : i32, i32
  }
}

</mosaic_0001>

<bundles_post_ra>
// kernel: tpu_custom_call.1
= control target key start
LH: loop header
LB: loop body
LE: loop exit
PB: predicated region body
PF: predicated region fallthrough
CT: control target
= control target key end

     0   :  { %v3671_v2 = vmov 0   ;;  %vm259_vm0 = vcmask 261120   ;;  %s4718_s0 = inlined_call_operand.vmem [shape: f32[32,128], index: 0, kind: input, shape index: {}]   ;;  %s4719_s1 = inlined_call_operand.vmem [shape: f32[32,1], index: 1, kind: input, shape index: {}]   ;;  %s4720_s2 = inlined_call_operand.vmem [shape: bf16[384,32], index: 2, kind: input, shape index: {}]   ;;  %s4721_s3 = inlined_call_operand.vmem [shape: bf16[32,128], index: 3, kind: input, shape index: {}]   ;;  %s4722_s4 = inlined_call_operand.vmem [shape: f32[32,1], index: 4, kind: input, shape index: {}]   ;;  %s4723_s5 = inlined_call_operand.hbm [shape: f32[32,128], index: 5, kind: output, shape index: {}]  }
   0x1   :  { %v63_v0 = vld [vmem:[%s4719_s1 + $0x10] sm:$0xff]  ;;  %v61_v1 = vld [vmem:[%s4719_s1] sm:$0xff]  ;;  %3362 = vset.pattern.permute.xlu1 %v3671_v2  ;;  %3361 = vset.pattern.permute.xlu0 %v3671_v2  ;;  %v64_v3 = vld [vmem:[%s4719_s1 + $0x18] sm:$0xff] }
   0x2   :  { %77 = vperm.xlu1 %3362, %v63_v0   ;;  %67 = vperm.xlu0 %3361, %v61_v1   ;;  %v62_v4 = vld [vmem:[%s4719_s1 + $0x8] sm:$0xff]  ;;  %v3363_v5 = vld [vmem:[%s4720_s2] sm:$0xff]  }
   0x3   :  { %3062 = vmatprep.mubr.msk.bf16.mxu0 %vm259_vm0, %v3363_v5  ;;  %v22_v6 = vld [vmem:[%s4718_s0] sm:$0xff]  ;;  %v23_v7 = vld [vmem:[%s4718_s0 + $0x8] sm:$0xff] }
   0x6   :  { %82 = vperm.xlu1 %3362, %v64_v3   ;;  %72 = vperm.xlu0 %3361, %v62_v4  }
   0x7   :  { %10 = vsyncpa [#allocation4], 0  ;;  %v26_v8 = vadd.f32 %v23_v7, %v22_v6  ;;  %v24_v9 = vld [vmem:[%s4718_s0 + $0x10] sm:$0xff]  ;;  %v25_v11 = vld [vmem:[%s4718_s0 + $0x18] sm:$0xff]  ;;  %vm674_vm1 = vcmask 523264   ;;  %s3672_s16 = smov 96  }
   0x8   :  { %v3364_v54 = vld [vmem:[%s4720_s2 + $0x8] sm:$0xff]   ;;  %v3365_v55 = vld [vmem:[%s4720_s2 + $0x10] sm:$0xff]   ;;  %v3366_v56 = vld [vmem:[%s4720_s2 + $0x18] sm:$0xff]   ;;  %s3673_s21 = smov 64   ;;  %s3674_s22 = smov 32   ;;  %vm1852_vm2 = vcmask 1048064  }
   0x9   :  { %v27_v10 = vadd.f32 %v26_v8, %v24_v9  ;;  %v3367_v57 = vld [vmem:[%s4720_s2 + $0x20] sm:$0xff]   ;;  %v3368_v58 = vld [vmem:[%s4720_s2 + $0x28] sm:$0xff]   ;;  %v3369_v59 = vld [vmem:[%s4720_s2 + $0x30] sm:$0xff]   ;;  %s3675_s14 = smov [#allocation3]  }
   0xa   :  { %v3370_v60 = vld [vmem:[%s4720_s2 + $0x38] sm:$0xff]   ;;  %v3371_v61 = vld [vmem:[%s4720_s2 + $0x40] sm:$0xff]   ;;  %v3372_v62 = vld [vmem:[%s4720_s2 + $0x48] sm:$0xff]   ;;  %s2817_s15 = sshll.u32 %s3675_s14, 4  ;;  %s2818_s15 = int_to_ptr.vmem [resolvable:$true] %s2817_s15 }
   0xb   :  { %v28_v12 = vadd.f32 %v27_v10, %v25_v11  ;;  %p3652_p1 = scmp.lt.s32.totalorder %s2818_s15, %s2818_s15 }
   0xd   :  { %v29_v13 = vrot.slane %v28_v12, 4 }
   0xf   :  { %v30_v14 = vadd.f32 %v29_v13, %v28_v12 }
  0x11   :  { %v31_v15 = vrot.slane %v30_v14, 2 }
  0x13   :  { %v32_v16 = vadd.f32 %v31_v15, %v30_v14 }
  0x15   :  { %v33_v17 = vrot.slane %v32_v16, 1 }
  0x17   :  { %v34_v18 = vadd.f32 %v33_v17, %v32_v16 }
  0x19   :  { %v36_v19 = vmul.f32 0.03125, %v34_v18 }
  0x1b   :  { %v37_v20 = vsub.f32 %v22_v6, %v36_v19  ;;  %v38_v21 = vsub.f32 %v23_v7, %v36_v19  ;;  %v39_v22 = vsub.f32 %v24_v9, %v36_v19  ;;  %v40_v25 = vsub.f32 %v25_v11, %v36_v19 }
  0x1d   :  { %v41_v23 = vmul.f32 %v37_v20, %v37_v20  ;;  %v42_v24 = vmul.f32 %v38_v21, %v38_v21  ;;  %v43_v26 = vmul.f32 %v39_v22, %v39_v22  ;;  %v44_v28 = vmul.f32 %v40_v25, %v40_v25 }
  0x1f   :  { %v45_v27 = vadd.f32 %v42_v24, %v41_v23 }
  0x21   :  { %v46_v29 = vadd.f32 %v45_v27, %v43_v26 }
  0x23   :  { %v47_v30 = vadd.f32 %v46_v29, %v44_v28 }
  0x25   :  { %v48_v31 = vrot.slane %v47_v30, 4 }
  0x27   :  { %v49_v32 = vadd.f32 %v48_v31, %v47_v30 }
  0x29   :  { %v50_v33 = vrot.slane %v49_v32, 2 }
  0x2b   :  { %v51_v34 = vadd.f32 %v50_v33, %v49_v32  ;;  %v3373_v33 = vld [vmem:[%s4720_s2 + $0x50] sm:$0xff]  }
  0x2d   :  { %v52_v35 = vrot.slane %v51_v34, 1 }
  0x2f   :  { %v53_v36 = vadd.f32 %v52_v35, %v51_v34  ;;  %v3374_v34 = vld [vmem:[%s4720_s2 + $0x58] sm:$0xff]   ;;  %v3375_v35 = vld [vmem:[%s4720_s2 + $0x60] sm:$0xff]  }
  0x31   :  { %v54_v37 = vmul.f32 0.03125, %v53_v36  ;;  %v3376_v36 = vld [vmem:[%s4720_s2 + $0x68] sm:$0xff]  }
  0x33   :  { %v55_v38 = vadd.f32 1e-05, %v54_v37  ;;  %v3377_v37 = vld [vmem:[%s4720_s2 + $0x70] sm:$0xff]  }
  0x35   :  { %3389 = vrsqrt.f32 %v55_v38  ;;  %v3378_v38 = vld [vmem:[%s4720_s2 + $0x78] sm:$0xff]  }
  0x3f   :  { %v3390_v39 = vpop.eup %3389 }
  0x40   :  { %v59_v42 = vmul.f32 %v3390_v39, %v39_v22  ;;  %v57_v43 = vmul.f32 %v3390_v39, %v37_v20  ;;  %v60_v44 = vmul.f32 %v3390_v39, %v40_v25  ;;  %v58_v45 = vmul.f32 %v3390_v39, %v38_v21  ;;  %v3379_v39 = vld [vmem:[%s4720_s2 + $0x80] sm:$0xff]  }
  0x81   :  { %v78_v40 = vpop.permute.xlu1 %77  ;;  %v68_v41 = vpop.permute.xlu0 %67 }
  0x82   :  { %v87_v48 = vmul.f32 %v78_v40, %v59_v42  ;;  %v85_v49 = vmul.f32 %v68_v41, %v57_v43  ;;  %v3380_v40 = vld [vmem:[%s4720_s2 + $0x88] sm:$0xff]  }
  0x85   :  { %v83_v46 = vpop.permute.xlu1 %82  ;;  %v73_v47 = vpop.permute.xlu0 %72 }
  0x86   :  { %v88_v50 = vmul.f32 %v83_v46, %v60_v44  ;;  %v86_v51 = vmul.f32 %v73_v47, %v58_v45 }
  0x88   :  { %v137_v52 = vpack.c.bf16 %v86_v51, %v85_v49  ;;  %v138_v53 = vpack.c.bf16 %v88_v50, %v87_v48 }
  0x8a   :  { %3058 = vmatprep.subr.bf16.mxu0 %v137_v52 }
  0x8b   :  { %3059 = vmatpush3.bf16.msra.mxu0 %v137_v52 }
  0x8c   :  { %3060 = vmatprep.subr.bf16.mxu0 %v138_v53 }
  0x8f   :  { %3061 = vmatpush3.bf16.msra.mxu0 %v138_v53 }
  0x92   :  { %3063 = vmatmul.mubr.msk.bf16.vlgmr.msra.gmra.mrb[0].mxu0 %vm259_vm0, %v3364_v54 }
  0x93   :  { %3066 = vmatprep.mubr.msk.bf16.mxu0 %vm259_vm0, %v3365_v55 }
  0x9a   :  { %3067 = vmatmul.mubr.msk.bf16.gmra.mrb[4].mxu0 %vm259_vm0, %v3366_v56 }
  0x9b   :  { %3070 = vmatprep.mubr.msk.bf16.mxu0 %vm259_vm0, %v3367_v57 }
  0xa2   :  { %3071 = vmatmul.mubr.msk.bf16.gmra.mrb[8].mxu0 %vm259_vm0, %v3368_v58 }
  0xa3   :  { %3074 = vmatprep.mubr.msk.bf16.mxu0 %vm259_vm0, %v3369_v59 }
  0xaa   :  { %3075 = vmatmul.mubr.msk.bf16.gmra.mrb[12].mxu0 %vm259_vm0, %v3370_v60 }
  0xab   :  { %3078 = vmatprep.mubr.msk.bf16.mxu0 %vm259_vm0, %v3371_v61 }
  0xb2   :  { %3079 = vmatmul.mubr.msk.bf16.gmra.mrb[16].mxu0 %vm259_vm0, %v3372_v62 }
  0xb3   :  { %3082 = vmatprep.mubr.msk.bf16.mxu0 %vm259_vm0, %v3373_v33 }
  0xba   :  { %3083 = vmatmul.mubr.msk.bf16.gmra.mrb[20].mxu0 %vm259_vm0, %v3374_v34 }
  0xbb   :  { %3086 = vmatprep.mubr.msk.bf16.mxu0 %vm259_vm0, %v3375_v35 }
  0xc2   :  { %3087 = vmatmul.mubr.msk.bf16.gmra.mrb[24].mxu0 %vm259_vm0, %v3376_v36 }
  0xc3   :  { %3090 = vmatprep.mubr.msk.bf16.mxu0 %vm259_vm0, %v3377_v37 }
  0xca   :  { %3091 = vmatmul.mubr.msk.bf16.gmra.mrb[28].mxu0 %vm259_vm0, %v3378_v38 }
  0xcb   :  { %3094 = vmatprep.mubr.msk.bf16.mxu0 %vm259_vm0, %v3379_v39 }
  0xd2   :  { %3095 = vmatmul.mubr.msk.bf16.gmra.mrb[32].mxu0 %vm259_vm0, %v3380_v40 }
 0x165   :  { %v3064_v63 = vpop.f32.mrb[0].mxu0 }
 0x166   :  { %v366_v0 = vpop.f32.mrb[1].mxu0 }
 0x167   :  { %v3065_v1 = vpop.f32.mrb[2].mxu0 }
 0x168   :  { %v558_v2 = vpack.c.bf16 %v3065_v1, %v3064_v63  ;;  %v369_v3 = vpop.f32.mrb[3].mxu0 }
 0x169   :  { %v557_v4 = vpack.c.bf16 %v369_v3, %v366_v0 }
 0x16b   :  { %581 = vxpose.xlu0.c.b16.start [1/8] %v557_v4, 128 }
 0x16d   :  { %v3068_v5 = vpop.f32.mrb[4].mxu0 }
 0x16e   :  { %v382_v6 = vpop.f32.mrb[5].mxu0 }
 0x16f   :  { %582 = vxpose.xlu0.c.b16.cont [2/8] %v558_v2, 128  ;;  %v3069_v7 = vpop.f32.mrb[6].mxu0 }
 0x170   :  { %v560_v8 = vpack.c.bf16 %v3069_v7, %v3068_v5  ;;  %v385_v9 = vpop.f32.mrb[7].mxu0 }
 0x171   :  { %v559_v10 = vpack.c.bf16 %v385_v9, %v382_v6 }
 0x173   :  { %583 = vxpose.xlu0.c.b16.cont [3/8] %v559_v10, 128 }
 0x175   :  { %v3072_v11 = vpop.f32.mrb[8].mxu0 }
 0x176   :  { %v398_v12 = vpop.f32.mrb[9].mxu0 }
 0x177   :  { %584 = vxpose.xlu0.c.b16.cont [4/8] %v560_v8, 128  ;;  %v3073_v13 = vpop.f32.mrb[10].mxu0 }
 0x178   :  { %v562_v14 = vpack.c.bf16 %v3073_v13, %v3072_v11  ;;  %v401_v15 = vpop.f32.mrb[11].mxu0 }
 0x179   :  { %v561_v16 = vpack.c.bf16 %v401_v15, %v398_v12 }
 0x17b   :  { %585 = vxpose.xlu0.c.b16.cont [5/8] %v561_v16, 128 }
 0x17d   :  { %v3076_v17 = vpop.f32.mrb[12].mxu0 }
 0x17e   :  { %v414_v18 = vpop.f32.mrb[13].mxu0 }
 0x17f   :  { %586 = vxpose.xlu0.c.b16.cont [6/8] %v562_v14, 128  ;;  %v3077_v19 = vpop.f32.mrb[14].mxu0 }
 0x180   :  { %v564_v20 = vpack.c.bf16 %v3077_v19, %v3076_v17  ;;  %v417_v21 = vpop.f32.mrb[15].mxu0 }
 0x181   :  { %v563_v22 = vpack.c.bf16 %v417_v21, %v414_v18 }
 0x183   :  { %587 = vxpose.xlu0.c.b16.cont [7/8] %v563_v22, 128 }
 0x185   :  { %v3080_v23 = vpop.f32.mrb[16].mxu0 }
 0x186   :  { %v430_v24 = vpop.f32.mrb[17].mxu0 }
 0x187   :  { %588 = vxpose.xlu0.c.b16.end [8/8] %v564_v20, 128  ;;  %v3081_v25 = vpop.f32.mrb[18].mxu0 }
 0x188   :  { %v3772_v26 = vpack.c.bf16 %v3081_v25, %v3080_v23  ;;  %v433_v27 = vpop.f32.mrb[19].mxu0 }
 0x189   :  { %v3774_v28 = vpack.c.bf16 %v433_v27, %v430_v24 }
 0x18b   :  { %3110 = vmatprep.subr.bf16.mxu1 %v3774_v28 }
 0x18c   :  { %3111 = vmatpush3.bf16.msra.mxu1 %v3774_v28 }
 0x18d   :  { %3112 = vmatprep.subr.bf16.mxu1 %v3772_v26 }
 0x190   :  { %3113 = vmatpush3.bf16.msra.mxu1 %v3772_v26 }
 0x1d1   :  { %v3780_v29 = vpop.trf.xlu0 }
 0x1d2   :  { %3114 = vmatprep.mubr.msk.bf16.mxu1 %vm259_vm0, %v3780_v29 }
 0x1d5   :  { %v3784_v30 = vpop.trf.xlu0 }
 0x1d6   :  { %3115 = vmatmul.mubr.msk.bf16.vlgmr.msra.gmra.mrb[0].mxu1 %vm259_vm0, %v3784_v30 }
 0x1d9   :  { %v3788_v31 = vpop.trf.xlu0 }
 0x1da   :  { %3118 = vmatprep.mubr.msk.bf16.mxu1 %vm259_vm0, %v3788_v31 }
 0x1dd   :  { %v3792_v32 = vpop.trf.xlu0 }
 0x1de   :  { %3119 = vmatmul.mubr.msk.bf16.gmra.mrb[4].mxu1 %vm259_vm0, %v3792_v32 }
 0x1e1   :  { %v3836_v57 = vpop.trf.xlu0 }
 0x1e5   :  { %v3838_v58 = vpop.trf.xlu0 }
 0x1e9   :  { %v3840_v62 = vpop.trf.xlu0 }
 0x1ed   :  { %v3842_v4 = vpop.trf.xlu0 }
 0x2a9   :  { %v3116_v41 = vpop.f32.mrb[0].mxu1 }
 0x2aa   :  { %v643_v42 = vpop.f32.mrb[1].mxu1  ;;  %v681_v50 = vsel %vm674_vm1, %v3116_v41, -inf }
 0x2ab   :  { %v3117_v43 = vpop.f32.mrb[2].mxu1  ;;  %v675_v44 = vsel %vm674_vm1, %v643_v42, -inf }
 0x2ac   :  { %676 = vmax.xlane.f32.xlu1 %v675_v44  ;;  %v646_v45 = vpop.f32.mrb[3].mxu1  ;;  %v684_v53 = vsel %vm674_vm1, %v3117_v43, -inf }
 0x2ad   :  { %v678_v46 = vsel %vm674_vm1, %v646_v45, -inf }
 0x2b0   :  { %679 = vmax.xlane.f32.xlu1 %v678_v46 }
 0x2b1   :  { %v3120_v47 = vpop.f32.mrb[4].mxu1 }
 0x2b2   :  { %v659_v48 = vpop.f32.mrb[5].mxu1  ;;  %v693_v56 = vsel %vm674_vm1, %v3120_v47, -inf }
 0x2b3   :  { %v3121_v49 = vpop.f32.mrb[6].mxu1  ;;  %v687_v54 = vsel %vm674_vm1, %v659_v48, -inf }
 0x2b4   :  { %682 = vmax.xlane.f32.xlu1 %v681_v50  ;;  %v696_v51 = vsel %vm674_vm1, %v3121_v49, -inf  ;;  %v662_v52 = vpop.f32.mrb[7].mxu1 }
 0x2b5   :  { %697 = vmax.xlane.f32.xlu0 %v696_v51  ;;  %v690_v55 = vsel %vm674_vm1, %v662_v52, -inf }
 0x2b8   :  { %685 = vmax.xlane.f32.xlu1 %v684_v53 }
 0x2bc   :  { %688 = vmax.xlane.f32.xlu1 %v687_v54 }
 0x2c0   :  { %691 = vmax.xlane.f32.xlu1 %v690_v55 }
 0x2c4   :  { %694 = vmax.xlane.f32.xlu1 %v693_v56 }
 0x339   :  { %v677_v59 = vpop.xlane.xlu1 %676 }
 0x33a   :  { %v699_v60 = vsub.f32 %v643_v42, %v677_v59 }
 0x33c   :  { %v707_v61 = vmul.f32 1.442695, %v699_v60 }
 0x33d   :  { %v680_v63 = vpop.xlane.xlu1 %679 }
 0x33e   :  { %3391 = vpow2.f32 %v707_v61  ;;  %v700_v0 = vsub.f32 %v646_v45, %v680_v63 }
 0x340   :  { %v709_v1 = vmul.f32 1.442695, %v700_v0 }
 0x341   :  { %v683_v2 = vpop.xlane.xlu1 %682 }
 0x342   :  { %3393 = vpow2.f32 %v709_v1  ;;  %v701_v3 = vsub.f32 %v3116_v41, %v683_v2  ;;  %v698_v10 = vpop.xlane.xlu0 %697 }
 0x343   :  { %v706_v15 = vsub.f32 %v3121_v49, %v698_v10 }
 0x344   :  { %v711_v5 = vmul.f32 1.442695, %v701_v3 }
 0x345   :  { %v686_v6 = vpop.xlane.xlu1 %685  ;;  %v721_v21 = vmul.f32 1.442695, %v706_v15 }
 0x346   :  { %3395 = vpow2.f32 %v711_v5  ;;  %v702_v7 = vsub.f32 %v3117_v43, %v686_v6  ;;  %v3084_v43 = vpop.f32.mrb[20].mxu0 }
 0x347   :  { %v446_v44 = vpop.f32.mrb[21].mxu0 }
 0x348   :  { %v3844_v8 = vpop.eup %3391  ;;  %v713_v9 = vmul.f32 1.442695, %v702_v7  ;;  %v3085_v45 = vpop.f32.mrb[22].mxu0 }
 0x349   :  { %v689_v11 = vpop.xlane.xlu1 %688  ;;  %v723_v12 = vsel %vm674_vm1, %v3844_v8, 0.0  ;;  %v3876_v46 = vpack.c.bf16 %v3085_v45, %v3084_v43 }
 0x34a   :  { %3397 = vpow2.f32 %v713_v9  ;;  %v703_v13 = vsub.f32 %v659_v48, %v689_v11  ;;  %724 = vadd.xlane.f32.xlu1 %v723_v12 }
 0x34c   :  { %v3848_v14 = vpop.eup %3393  ;;  %v715_v16 = vmul.f32 1.442695, %v703_v13 }
 0x34d   :  { %v692_v17 = vpop.xlane.xlu1 %691  ;;  %v726_v18 = vsel %vm674_vm1, %v3848_v14, 0.0 }
 0x34e   :  { %3399 = vpow2.f32 %v715_v16  ;;  %v704_v19 = vsub.f32 %v662_v52, %v692_v17  ;;  %727 = vadd.xlane.f32.xlu1 %v726_v18 }
 0x350   :  { %v3852_v20 = vpop.eup %3395  ;;  %v717_v22 = vmul.f32 1.442695, %v704_v19 }
 0x351   :  { %v695_v23 = vpop.xlane.xlu1 %694  ;;  %v729_v24 = vsel %vm674_vm1, %v3852_v20, 0.0 }
 0x352   :  { %3401 = vpow2.f32 %v717_v22  ;;  %v705_v25 = vsub.f32 %v3120_v47, %v695_v23  ;;  %730 = vadd.xlane.f32.xlu1 %v729_v24  ;;  %v449_v47 = vpop.f32.mrb[23].mxu0 }
 0x353   :  { %3403 = vpow2.f32 %v721_v21  ;;  %v3878_v48 = vpack.c.bf16 %v449_v47, %v446_v44  ;;  %v3088_v49 = vpop.f32.mrb[24].mxu0 }
 0x354   :  { %v3856_v27 = vpop.eup %3397  ;;  %v719_v33 = vmul.f32 1.442695, %v705_v25  ;;  %v462_v50 = vpop.f32.mrb[25].mxu0 }
 0x355   :  { %v732_v34 = vsel %vm674_vm1, %v3856_v27, 0.0  ;;  %v3089_v51 = vpop.f32.mrb[26].mxu0 }
 0x356   :  { %3405 = vpow2.f32 %v719_v33  ;;  %733 = vadd.xlane.f32.xlu0 %v732_v34  ;;  %v3882_v52 = vpack.c.bf16 %v3089_v51, %v3088_v49  ;;  %v465_v53 = vpop.f32.mrb[27].mxu0  ;;  %v3381_v51 = vld [vmem:[%s4720_s2 + $0x90] sm:$0xff]  }
 0x357   :  { %v3884_v54 = vpack.c.bf16 %v465_v53, %v462_v50  ;;  %v3092_v55 = vpop.f32.mrb[28].mxu0  ;;  %v3382_v53 = vld [vmem:[%s4720_s2 + $0x98] sm:$0xff]   ;;  %3098 = vmatprep.mubr.msk.bf16.mxu0 %vm259_vm0, %v3381_v51 }
 0x358   :  { %v3860_v35 = vpop.eup %3399  ;;  %v478_v56 = vpop.f32.mrb[29].mxu0  ;;  %3099 = vmatmul.mubr.msk.bf16.gmra.mrb[36].mxu0 %vm259_vm0, %v3382_v53 }
 0x359   :  { %v735_v36 = vsel %vm674_vm1, %v3860_v35, 0.0  ;;  %v3093_v59 = vpop.f32.mrb[30].mxu0 }
 0x35a   :  { %736 = vadd.xlane.f32.xlu1 %v735_v36  ;;  %v3892_v60 = vpack.c.bf16 %v3093_v59, %v3092_v55  ;;  %v481_v61 = vpop.f32.mrb[31].mxu0 }
 0x35b   :  { %v3894_v63 = vpack.c.bf16 %v481_v61, %v478_v56  ;;  %v3096_v0 = vpop.f32.mrb[32].mxu0 }
 0x35c   :  { %v3864_v37 = vpop.eup %3401  ;;  %v494_v1 = vpop.f32.mrb[33].mxu0 }
 0x35d   :  { %v738_v38 = vsel %vm674_vm1, %v3864_v37, 0.0  ;;  %v3868_v39 = vpop.eup %3403  ;;  %v3097_v2 = vpop.f32.mrb[34].mxu0 }
 0x35e   :  { %739 = vadd.xlane.f32.xlu0 %v738_v38  ;;  %v744_v41 = vsel %vm674_vm1, %v3868_v39, 0.0  ;;  %v3896_v3 = vpack.c.bf16 %v3097_v2, %v3096_v0  ;;  %v497_v5 = vpop.f32.mrb[35].mxu0 }
 0x35f   :  { %v3898_v6 = vpack.c.bf16 %v497_v5, %v494_v1 }
 0x360   :  { %v3870_v40 = vpop.eup %3405 }
 0x361   :  { %v741_v42 = vsel %vm674_vm1, %v3870_v40, 0.0  ;;  %3130 = vmatprep.mubr.msk.bf16.mxu1 %vm674_vm1, %v3898_v6 }
 0x362   :  { %745 = vadd.xlane.f32.xlu0 %v744_v41  ;;  %742 = vadd.xlane.f32.xlu1 %v741_v42 }
 0x373   :  { %842 = vrot.lane.b32.xlu1 %v3780_v29, %s3672_s16 }
 0x377   :  { %846 = vrot.lane.b32.xlu1 %v3788_v31, %s3672_s16 }
 0x378   :  { %844 = vrot.lane.b32.xlu0 %v3784_v30, %s3672_s16 }
 0x37b   :  { %848 = vrot.lane.b32.xlu1 %v3792_v32, %s3672_s16 }
 0x3d7   :  { %v725_v7 = vpop.xlane.xlu1 %724 }
 0x3d8   :  { %3407 = vrcp.f32 %v725_v7 }
 0x3db   :  { %v728_v9 = vpop.xlane.xlu1 %727 }
 0x3dc   :  { %3409 = vrcp.f32 %v728_v9 }
 0x3df   :  { %v731_v10 = vpop.xlane.xlu1 %730 }
 0x3e0   :  { %3411 = vrcp.f32 %v731_v10 }
 0x3e2   :  { %v3408_v12 = vpop.eup %3407 }
 0x3e3   :  { %v734_v11 = vpop.xlane.xlu0 %733  ;;  %v755_v16 = vmul.f32 %v3408_v12, %v3844_v8 }
 0x3e4   :  { %3413 = vrcp.f32 %v734_v11 }
 0x3e6   :  { %v3410_v13 = vpop.eup %3409 }
 0x3e7   :  { %v737_v15 = vpop.xlane.xlu1 %736  ;;  %v756_v17 = vmul.f32 %v3410_v13, %v3848_v14 }
 0x3e8   :  { %3415 = vrcp.f32 %v737_v15 }
 0x3e9   :  { %v763_v18 = vpack.c.bf16 %v756_v17, %v755_v16 }
 0x3ea   :  { %v3412_v22 = vpop.eup %3411 }
 0x3eb   :  { %v740_v19 = vpop.xlane.xlu0 %739  ;;  %3322 = vmatprep.subr.msk.bf16.mxu1 %vm674_vm1, %v763_v18  ;;  %v774_v21 = vsel %vm674_vm1, %v763_v18, 0  ;;  %v757_v33 = vmul.f32 %v3412_v22, %v3852_v20 }
 0x3ec   :  { %3417 = vrcp.f32 %v740_v19  ;;  %3123 = vmatpush3.bf16.xpose.msra.mxu1 %v774_v21 }
 0x3ee   :  { %v3414_v23 = vpop.eup %3413 }
 0x3ef   :  { %v746_v24 = vpop.xlane.xlu0 %745  ;;  %v743_v25 = vpop.xlane.xlu1 %742  ;;  %v758_v34 = vmul.f32 %v3414_v23, %v3856_v27 }
 0x3f0   :  { %3419 = vrcp.f32 %v746_v24 }
 0x3f1   :  { %3421 = vrcp.f32 %v743_v25  ;;  %v764_v8 = vpack.c.bf16 %v758_v34, %v757_v33 }
 0x3f2   :  { %v3416_v36 = vpop.eup %3415 }
 0x3f3   :  { %3323 = vmatprep.subr.msk.bf16.mxu1 %vm674_vm1, %v764_v8  ;;  %v777_v14 = vsel %vm674_vm1, %v764_v8, 0  ;;  %v759_v41 = vmul.f32 %v3416_v36, %v3860_v35  ;;  %v843_v35 = vpop.permute.xlu1 %842 }
 0x3f4   :  { %3125 = vmatpush3.bf16.xpose.msra.mxu1 %v777_v14 }
 0x3f6   :  { %v3418_v38 = vpop.eup %3417 }
 0x3f7   :  { %v760_v42 = vmul.f32 %v3418_v38, %v3864_v37  ;;  %v845_v37 = vpop.permute.xlu0 %844 }
 0x3f9   :  { %v765_v43 = vpack.c.bf16 %v760_v42, %v759_v41 }
 0x3fa   :  { %v3420_v44 = vpop.eup %3419 }
 0x3fb   :  { %v3422_v45 = vpop.eup %3421  ;;  %3324 = vmatprep.subr.msk.bf16.mxu1 %vm674_vm1, %v765_v43  ;;  %v780_v20 = vsel %vm674_vm1, %v765_v43, 0  ;;  %v762_v27 = vmul.f32 %v3420_v44, %v3868_v39  ;;  %v847_v39 = vpop.permute.xlu1 %846 }
 0x3fc   :  { %3127 = vmatpush3.bf16.xpose.msra.mxu1 %v780_v20  ;;  %v761_v47 = vmul.f32 %v3422_v45, %v3870_v40 }
 0x3fe   :  { %v766_v49 = vpack.c.bf16 %v762_v27, %v761_v47 }
 0x3ff   :  { %v849_v40 = vpop.permute.xlu1 %848 }
 0x400   :  { %3325 = vmatprep.subr.msk.bf16.mxu1 %vm674_vm1, %v766_v49  ;;  %v783_v50 = vsel %vm674_vm1, %v766_v49, 0 }
 0x404   :  { %3129 = vmatpush3.bf16.xpose.msra.mxu1 %v783_v50 }
 0x405   :  { %3134 = vmatprep.subr.bf16.mxu1 %v3878_v48 }
 0x40b   :  { %3131 = vmatmul.mubr.msk.bf16.vlgmr.msra.gmra.mrb[8].mxu1 %vm674_vm1, %v3896_v3 }
 0x40c   :  { %3135 = vmatpush3.bf16.msra.mxu1 %v3878_v48  ;;  %3138 = vmatprep.mubr.msk.bf16.mxu1 %vm259_vm0, %v843_v35 }
 0x40d   :  { %3136 = vmatprep.subr.bf16.mxu1 %v3876_v46 }
 0x410   :  { %3137 = vmatpush3.bf16.msra.mxu1 %v3876_v46 }
 0x413   :  { %3139 = vmatmul.mubr.msk.bf16.vlgmr.msra.gmra.mrb[12].mxu1 %vm259_vm0, %v845_v37 }
 0x414   :  { %3142 = vmatprep.mubr.msk.bf16.mxu1 %vm259_vm0, %v847_v39 }
 0x41b   :  { %3143 = vmatmul.mubr.msk.bf16.gmra.mrb[16].mxu1 %vm259_vm0, %v849_v40 }
 0x4de   :  { %v3132_v55 = vpop.f32.mrb[8].mxu1 }
 0x4df   :  { %836 = vst.msk [vmem:[#allocation2 + $0x10] sm:$0xff] %vm674_vm1, %v3132_v55  ;;  %v819_v56 = vpop.f32.mrb[9].mxu1 }
 0x4e0   :  { %834 = vst.msk [vmem:[#allocation2] sm:$0xff] %vm674_vm1, %v819_v56  ;;  %v3133_v59 = vpop.f32.mrb[10].mxu1 }
 0x4e1   :  { %837 = vst.msk [vmem:[#allocation2 + $0x18] sm:$0xff] %vm674_vm1, %v3133_v59  ;;  %v822_v61 = vpop.f32.mrb[11].mxu1 }
 0x4e2   :  { %835 = vst.msk [vmem:[#allocation2 + $0x8] sm:$0xff] %vm674_vm1, %v822_v61 }
 0x4e6   :  { %v3140_v0 = vpop.f32.mrb[12].mxu1 }
 0x4e7   :  { %v896_v1 = vpop.f32.mrb[13].mxu1  ;;  %v933_v10 = vsel %vm674_vm1, %v3140_v0, -inf }
 0x4e8   :  { %v3141_v2 = vpop.f32.mrb[14].mxu1  ;;  %v927_v5 = vsel %vm674_vm1, %v896_v1, -inf }
 0x4e9   :  { %928 = vmax.xlane.f32.xlu0 %v927_v5  ;;  %v899_v7 = vpop.f32.mrb[15].mxu1  ;;  %v936_v15 = vsel %vm674_vm1, %v3141_v2, -inf }
 0x4ea   :  { %v930_v9 = vsel %vm674_vm1, %v899_v7, -inf }
 0x4eb   :  { %931 = vmax.xlane.f32.xlu1 %v930_v9 }
 0x4ed   :  { %934 = vmax.xlane.f32.xlu0 %v933_v10 }
 0x4ee   :  { %v3144_v11 = vpop.f32.mrb[16].mxu1 }
 0x4ef   :  { %v912_v12 = vpop.f32.mrb[17].mxu1  ;;  %v945_v18 = vsel %vm674_vm1, %v3144_v11, -inf }
 0x4f0   :  { %v3145_v13 = vpop.f32.mrb[18].mxu1  ;;  %v939_v16 = vsel %vm674_vm1, %v912_v12, -inf }
 0x4f1   :  { %937 = vmax.xlane.f32.xlu0 %v936_v15  ;;  %940 = vmax.xlane.f32.xlu1 %v939_v16  ;;  %v915_v17 = vpop.f32.mrb[19].mxu1  ;;  %v948_v21 = vsel %vm674_vm1, %v3145_v13, -inf  ;;  %v3100_v15 = vpop.f32.mrb[36].mxu0 }
 0x4f2   :  { %v942_v19 = vsel %vm674_vm1, %v915_v17, -inf  ;;  %v510_v16 = vpop.f32.mrb[37].mxu0 }
 0x4f5   :  { %946 = vmax.xlane.f32.xlu1 %v945_v18  ;;  %943 = vmax.xlane.f32.xlu0 %v942_v19 }
 0x4f9   :  { %949 = vmax.xlane.f32.xlu0 %v948_v21 }
 0x576   :  { %v929_v22 = vpop.xlane.xlu0 %928 }
 0x577   :  { %v951_v23 = vsub.f32 %v896_v1, %v929_v22 }
 0x578   :  { %v932_v24 = vpop.xlane.xlu1 %931 }
 0x579   :  { %v959_v25 = vmul.f32 1.442695, %v951_v23  ;;  %v952_v33 = vsub.f32 %v899_v7, %v932_v24 }
 0x57a   :  { %v935_v34 = vpop.xlane.xlu0 %934 }
 0x57b   :  { %3423 = vpow2.f32 %v959_v25  ;;  %v961_v8 = vmul.f32 1.442695, %v952_v33  ;;  %v953_v14 = vsub.f32 %v3140_v0, %v935_v34 }
 0x57d   :  { %3425 = vpow2.f32 %v961_v8  ;;  %v963_v36 = vmul.f32 1.442695, %v953_v14 }
 0x57e   :  { %v938_v38 = vpop.xlane.xlu0 %937  ;;  %v941_v41 = vpop.xlane.xlu1 %940 }
 0x57f   :  { %3427 = vpow2.f32 %v963_v36  ;;  %v954_v42 = vsub.f32 %v3141_v2, %v938_v38  ;;  %v955_v43 = vsub.f32 %v912_v12, %v941_v41 }
 0x581   :  { %v965_v44 = vmul.f32 1.442695, %v954_v42  ;;  %v967_v45 = vmul.f32 1.442695, %v955_v43 }
 0x582   :  { %v947_v20 = vpop.xlane.xlu1 %946  ;;  %v944_v27 = vpop.xlane.xlu0 %943 }
 0x583   :  { %3429 = vpow2.f32 %v965_v44  ;;  %v957_v47 = vsub.f32 %v3144_v11, %v947_v20  ;;  %v956_v49 = vsub.f32 %v915_v17, %v944_v27  ;;  %v3101_v17 = vpop.f32.mrb[38].mxu0 }
 0x584   :  { %3431 = vpow2.f32 %v967_v45  ;;  %v3981_v18 = vpack.c.bf16 %v3101_v17, %v3100_v15  ;;  %v513_v19 = vpop.f32.mrb[39].mxu0 }
 0x585   :  { %v3424_v50 = vpop.eup %3423  ;;  %v971_v35 = vmul.f32 1.442695, %v957_v47  ;;  %v969_v37 = vmul.f32 1.442695, %v956_v49  ;;  %v3983_v21 = vpack.c.bf16 %v513_v19, %v510_v16 }
 0x586   :  { %v950_v39 = vpop.xlane.xlu0 %949  ;;  %v975_v40 = vsel %vm674_vm1, %v3424_v50, 0.0 }
 0x587   :  { %v3426_v51 = vpop.eup %3425  ;;  %3433 = vpow2.f32 %v971_v35  ;;  %v958_v53 = vsub.f32 %v3145_v13, %v950_v39  ;;  %976 = vadd.xlane.f32.xlu1 %v975_v40  ;;  %3154 = vmatprep.mubr.msk.bf16.mxu1 %vm674_vm1, %v3983_v21 }
 0x588   :  { %3435 = vpow2.f32 %v969_v37  ;;  %v978_v55 = vsel %vm674_vm1, %v3426_v51, 0.0 }
 0x589   :  { %v3950_v56 = vpop.eup %3427  ;;  %v973_v59 = vmul.f32 1.442695, %v958_v53  ;;  %979 = vadd.xlane.f32.xlu0 %v978_v55 }
 0x58a   :  { %v981_v61 = vsel %vm674_vm1, %v3950_v56, 0.0 }
 0x58b   :  { %3437 = vpow2.f32 %v973_v59  ;;  %982 = vadd.xlane.f32.xlu1 %v981_v61 }
 0x58d   :  { %v3430_v0 = vpop.eup %3429 }
 0x58e   :  { %v3954_v1 = vpop.eup %3431  ;;  %v984_v2 = vsel %vm674_vm1, %v3430_v0, 0.0 }
 0x58f   :  { %v987_v5 = vsel %vm674_vm1, %v3954_v1, 0.0  ;;  %985 = vadd.xlane.f32.xlu0 %v984_v2 }
 0x590   :  { %988 = vadd.xlane.f32.xlu1 %v987_v5 }
 0x591   :  { %v3959_v7 = vpop.eup %3433 }
 0x592   :  { %v3436_v9 = vpop.eup %3435  ;;  %v993_v10 = vsel %vm674_vm1, %v3959_v7, 0.0 }
 0x593   :  { %v990_v11 = vsel %vm674_vm1, %v3436_v9, 0.0 }
 0x594   :  { %994 = vadd.xlane.f32.xlu1 %v993_v10  ;;  %991 = vadd.xlane.f32.xlu0 %v990_v11  ;;  %v3383_v10 = vld [vmem:[%s4720_s2 + $0xa0] sm:$0xff]   ;;  %v3384_v11 = vld [vmem:[%s4720_s2 + $0xa8] sm:$0xff]  }
 0x595   :  { %v3438_v12 = vpop.eup %3437  ;;  %3102 = vmatprep.mubr.msk.bf16.mxu0 %vm259_vm0, %v3383_v10 }
 0x596   :  { %v996_v13 = vsel %vm674_vm1, %v3438_v12, 0.0  ;;  %3103 = vmatmul.mubr.msk.bf16.gmra.mrb[40].mxu0 %vm259_vm0, %v3384_v11 }
 0x598   :  { %997 = vadd.xlane.f32.xlu0 %v996_v13 }
 0x5a5   :  { %1090 = vrot.lane.b32.xlu1 %v3780_v29, %s3673_s21 }
 0x5a9   :  { %1094 = vrot.lane.b32.xlu1 %v3788_v31, %s3673_s21 }
 0x5ad   :  { %1096 = vrot.lane.b32.xlu1 %v3792_v32, %s3673_s21 }
 0x5ae   :  { %1092 = vrot.lane.b32.xlu0 %v3784_v30, %s3673_s21 }
 0x5b1   :  { %1340 = vrot.lane.b32.xlu1 %v3784_v30, %s3674_s22 }
 0x5b2   :  { %1338 = vrot.lane.b32.xlu0 %v3780_v29, %s3674_s22 }
 0x5b5   :  { %1344 = vrot.lane.b32.xlu1 %v3792_v32, %s3674_s22 }
 0x5b6   :  { %1342 = vrot.lane.b32.xlu0 %v3788_v31, %s3674_s22 }
 0x614   :  { %v977_v30 = vpop.xlane.xlu1 %976 }
 0x615   :  { %3439 = vrcp.f32 %v977_v30 }
 0x616   :  { %v980_v29 = vpop.xlane.xlu0 %979 }
 0x617   :  { %3441 = vrcp.f32 %v980_v29 }
 0x618   :  { %v983_v22 = vpop.xlane.xlu1 %982 }
 0x619   :  { %3443 = vrcp.f32 %v983_v22 }
 0x61c   :  { %v986_v32 = vpop.xlane.xlu0 %985 }
 0x61d   :  { %3445 = vrcp.f32 %v986_v32  ;;  %v989_v31 = vpop.xlane.xlu1 %988 }
 0x61e   :  { %3447 = vrcp.f32 %v989_v31 }
 0x61f   :  { %v3440_v23 = vpop.eup %3439 }
 0x620   :  { %v1007_v33 = vmul.f32 %v3440_v23, %v3424_v50 }
 0x621   :  { %v3442_v24 = vpop.eup %3441  ;;  %v992_v25 = vpop.xlane.xlu0 %991 }
 0x622   :  { %v1008_v34 = vmul.f32 %v3442_v24, %v3426_v51  ;;  %3449 = vrcp.f32 %v992_v25  ;;  %v995_v8 = vpop.xlane.xlu1 %994 }
 0x623   :  { %v3444_v36 = vpop.eup %3443 }
 0x624   :  { %v1015_v14 = vpack.c.bf16 %v1008_v34, %v1007_v33  ;;  %v1009_v43 = vmul.f32 %v3444_v36, %v3950_v56 }
 0x625   :  { %v998_v38 = vpop.xlane.xlu0 %997 }
 0x626   :  { %3451 = vrcp.f32 %v998_v38  ;;  %3326 = vmatprep.subr.msk.bf16.mxu1 %vm674_vm1, %v1015_v14  ;;  %v1026_v41 = vsel %vm674_vm1, %v1015_v14, 0  ;;  %v1091_v59 = vpop.permute.xlu1 %1090 }
 0x627   :  { %v3446_v42 = vpop.eup %3445  ;;  %3453 = vrcp.f32 %v995_v8  ;;  %3147 = vmatpush3.bf16.xpose.msra.mxu1 %v1026_v41 }
 0x628   :  { %v1010_v44 = vmul.f32 %v3446_v42, %v3430_v0  ;;  %v3448_v20 = vpop.eup %3447 }
 0x629   :  { %v1011_v49 = vmul.f32 %v3448_v20, %v3954_v1  ;;  %v1093_v61 = vpop.permute.xlu0 %1092 }
 0x62a   :  { %v1016_v45 = vpack.c.bf16 %v1010_v44, %v1009_v43  ;;  %v1095_v0 = vpop.permute.xlu1 %1094 }
 0x62c   :  { %3327 = vmatprep.subr.msk.bf16.mxu1 %vm674_vm1, %v1016_v45  ;;  %v3450_v27 = vpop.eup %3449  ;;  %v1029_v47 = vsel %vm674_vm1, %v1016_v45, 0 }
 0x62d   :  { %v1012_v50 = vmul.f32 %v3450_v27, %v3436_v9  ;;  %v1339_v2 = vpop.permute.xlu0 %1338 }
 0x62e   :  { %v1097_v1 = vpop.permute.xlu1 %1096 }
 0x62f   :  { %3149 = vmatpush3.bf16.xpose.msra.mxu1 %v1029_v47  ;;  %v1017_v37 = vpack.c.bf16 %v1012_v50, %v1011_v49 }
 0x630   :  { %v3452_v35 = vpop.eup %3451 }
 0x631   :  { %v3454_v39 = vpop.eup %3453  ;;  %3328 = vmatprep.subr.msk.bf16.mxu1 %vm674_vm1, %v1017_v37  ;;  %v1014_v40 = vmul.f32 %v3452_v35, %v3438_v12  ;;  %v1032_v53 = vsel %vm674_vm1, %v1017_v37, 0 }
 0x632   :  { %v1013_v51 = vmul.f32 %v3454_v39, %v3959_v7  ;;  %v1341_v5 = vpop.permute.xlu1 %1340  ;;  %v1343_v7 = vpop.permute.xlu0 %1342 }
 0x634   :  { %v1018_v55 = vpack.c.bf16 %v1014_v40, %v1013_v51 }
 0x636   :  { %v1035_v56 = vsel %vm674_vm1, %v1018_v55, 0  ;;  %v1345_v9 = vpop.permute.xlu1 %1344 }
 0x637   :  { %3151 = vmatpush3.bf16.xpose.msra.mxu1 %v1032_v53 }
 0x638   :  { %3329 = vmatprep.subr.msk.bf16.mxu1 %vm674_vm1, %v1018_v55  ;;  %v3385_v55 = vld [vmem:[%s4720_s2 + $0xb0] sm:$0xff]  }
 0x639   :  { %3106 = vmatprep.mubr.msk.bf16.mxu0 %vm259_vm0, %v3385_v55 }
 0x63f   :  { %3153 = vmatpush3.bf16.xpose.msra.mxu1 %v1035_v56  ;;  %v3386_v56 = vld [vmem:[%s4720_s2 + $0xb8] sm:$0xff]  }
 0x640   :  { %3158 = vmatprep.subr.bf16.mxu1 %v3884_v54  ;;  %3107 = vmatmul.mubr.msk.bf16.gmra.mrb[44].mxu0 %vm259_vm0, %v3386_v56 }
 0x646   :  { %3155 = vmatmul.mubr.msk.bf16.vlgmr.msra.gmra.mrb[20].mxu1 %vm674_vm1, %v3981_v18 }
 0x647   :  { %3159 = vmatpush3.bf16.msra.mxu1 %v3884_v54  ;;  %3162 = vmatprep.mubr.msk.bf16.mxu1 %vm259_vm0, %v1091_v59 }
 0x648   :  { %3160 = vmatprep.subr.bf16.mxu1 %v3882_v52 }
 0x64b   :  { %3161 = vmatpush3.bf16.msra.mxu1 %v3882_v52 }
 0x64c   :  { %3182 = vmatprep.subr.bf16.mxu1 %v3894_v63 }
 0x64e   :  { %3163 = vmatmul.mubr.msk.bf16.vlgmr.msra.gmra.mrb[24].mxu1 %vm259_vm0, %v1093_v61 }
 0x64f   :  { %3166 = vmatprep.mubr.msk.bf16.mxu1 %vm259_vm0, %v1095_v0  ;;  %3183 = vmatpush3.bf16.msra.mxu1 %v3894_v63 }
 0x650   :  { %3184 = vmatprep.subr.bf16.mxu1 %v3892_v60 }
 0x653   :  { %3185 = vmatpush3.bf16.msra.mxu1 %v3892_v60 }
 0x656   :  { %3167 = vmatmul.mubr.msk.bf16.gmra.mrb[28].mxu1 %vm259_vm0, %v1097_v1 }
 0x657   :  { %3186 = vmatprep.mubr.msk.bf16.mxu1 %vm259_vm0, %v1339_v2 }
 0x65e   :  { %3187 = vmatmul.mubr.msk.bf16.vlgmr.msra.gmra.mrb[32].mxu1 %vm259_vm0, %v1341_v5 }
 0x65f   :  { %3190 = vmatprep.mubr.msk.bf16.mxu1 %vm259_vm0, %v1343_v7 }
 0x666   :  { %3191 = vmatmul.mubr.msk.bf16.gmra.mrb[36].mxu1 %vm259_vm0, %v1345_v9 }
 0x667   :  { %3210 = vmatprep.mubr.msk.bf16.mxu1 %vm259_vm0, %v3836_v57 }
 0x719   :  { %v3156_v12 = vpop.f32.mrb[20].mxu1 }
 0x71a   :  { %1088 = vst.msk [vmem:[#allocation2 + $0x30] sm:$0xff] %vm674_vm1, %v3156_v12  ;;  %v1071_v13 = vpop.f32.mrb[21].mxu1 }
 0x71b   :  { %1086 = vst.msk [vmem:[#allocation2 + $0x20] sm:$0xff] %vm674_vm1, %v1071_v13  ;;  %v3157_v15 = vpop.f32.mrb[22].mxu1 }
 0x71c   :  { %1089 = vst.msk [vmem:[#allocation2 + $0x38] sm:$0xff] %vm674_vm1, %v3157_v15  ;;  %v1074_v16 = vpop.f32.mrb[23].mxu1 }
 0x71d   :  { %1087 = vst.msk [vmem:[#allocation2 + $0x28] sm:$0xff] %vm674_vm1, %v1074_v16 }
 0x721   :  { %v3164_v17 = vpop.f32.mrb[24].mxu1 }
 0x722   :  { %v1144_v19 = vpop.f32.mrb[25].mxu1  ;;  %v1181_v31 = vsel %vm674_vm1, %v3164_v17, -inf }
 0x723   :  { %v4030_v30 = vpop.f32.mrb[26].mxu1  ;;  %v1175_v29 = vsel %vm674_vm1, %v1144_v19, -inf }
 0x724   :  { %1176 = vmax.xlane.f32.xlu0 %v1175_v29  ;;  %v1147_v22 = vpop.f32.mrb[27].mxu1  ;;  %v1184_v33 = vsel %vm674_vm1, %v4030_v30, -inf }
 0x725   :  { %v1178_v32 = vsel %vm674_vm1, %v1147_v22, -inf }
 0x726   :  { %1179 = vmax.xlane.f32.xlu1 %v1178_v32 }
 0x728   :  { %1182 = vmax.xlane.f32.xlu0 %v1181_v31 }
 0x729   :  { %v4035_v23 = vpop.f32.mrb[28].mxu1 }
 0x72a   :  { %v1160_v24 = vpop.f32.mrb[29].mxu1  ;;  %v1193_v14 = vsel %vm674_vm1, %v4035_v23, -inf }
 0x72b   :  { %v4037_v25 = vpop.f32.mrb[30].mxu1  ;;  %v1187_v34 = vsel %vm674_vm1, %v1160_v24, -inf }
 0x72c   :  { %1185 = vmax.xlane.f32.xlu0 %v1184_v33  ;;  %1188 = vmax.xlane.f32.xlu1 %v1187_v34  ;;  %v1163_v8 = vpop.f32.mrb[31].mxu1  ;;  %v1196_v44 = vsel %vm674_vm1, %v4037_v25, -inf }
 0x72d   :  { %v1190_v36 = vsel %vm674_vm1, %v1163_v8, -inf }
 0x730   :  { %1194 = vmax.xlane.f32.xlu1 %v1193_v14  ;;  %1191 = vmax.xlane.f32.xlu0 %v1190_v36 }
 0x731   :  { %v4045_v38 = vpop.f32.mrb[32].mxu1 }
 0x732   :  { %v4047_v41 = vpop.f32.mrb[33].mxu1  ;;  %v1429_v20 = vsel %vm674_vm1, %v4045_v38, -inf }
 0x733   :  { %v4049_v42 = vpop.f32.mrb[34].mxu1  ;;  %v1423_v43 = vsel %vm674_vm1, %v4047_v41, -inf }
 0x734   :  { %1424 = vmax.xlane.f32.xlu1 %v1423_v43  ;;  %v4055_v45 = vpop.f32.mrb[35].mxu1  ;;  %1197 = vmax.xlane.f32.xlu0 %v1196_v44  ;;  %v1432_v37 = vsel %vm674_vm1, %v4049_v42, -inf }
 0x735   :  { %v1426_v27 = vsel %vm674_vm1, %v4055_v45, -inf }
 0x738   :  { %1430 = vmax.xlane.f32.xlu1 %v1429_v20  ;;  %1427 = vmax.xlane.f32.xlu0 %v1426_v27 }
 0x739   :  { %v4061_v47 = vpop.f32.mrb[36].mxu1 }
 0x73a   :  { %v4063_v49 = vpop.f32.mrb[37].mxu1  ;;  %v1441_v40 = vsel %vm674_vm1, %v4061_v47, -inf }
 0x73b   :  { %v4065_v50 = vpop.f32.mrb[38].mxu1  ;;  %v1435_v35 = vsel %vm674_vm1, %v4063_v49, -inf }
 0x73c   :  { %1436 = vmax.xlane.f32.xlu1 %v1435_v35  ;;  %v4071_v39 = vpop.f32.mrb[39].mxu1  ;;  %1433 = vmax.xlane.f32.xlu0 %v1432_v37  ;;  %v1444_v53 = vsel %vm674_vm1, %v4065_v50, -inf }
 0x73d   :  { %v1438_v51 = vsel %vm674_vm1, %v4071_v39, -inf }
 0x740   :  { %1442 = vmax.xlane.f32.xlu1 %v1441_v40  ;;  %1439 = vmax.xlane.f32.xlu0 %v1438_v51 }
 0x744   :  { %1445 = vmax.xlane.f32.xlu0 %v1444_v53 }
 0x7b1   :  { %v1177_v59 = vpop.xlane.xlu0 %1176 }
 0x7b2   :  { %v1199_v61 = vsub.f32 %v1144_v19, %v1177_v59 }
 0x7b3   :  { %v1180_v0 = vpop.xlane.xlu1 %1179 }
 0x7b4   :  { %v1207_v1 = vmul.f32 1.442695, %v1199_v61  ;;  %v1200_v2 = vsub.f32 %v1147_v22, %v1180_v0 }
 0x7b5   :  { %v1183_v5 = vpop.xlane.xlu0 %1182 }
 0x7b6   :  { %3455 = vpow2.f32 %v1207_v1  ;;  %v1209_v7 = vmul.f32 1.442695, %v1200_v2  ;;  %v1201_v9 = vsub.f32 %v3164_v17, %v1183_v5 }
 0x7b8   :  { %3457 = vpow2.f32 %v1209_v7  ;;  %v1211_v10 = vmul.f32 1.442695, %v1201_v9 }
 0x7b9   :  { %v1186_v11 = vpop.xlane.xlu0 %1185  ;;  %v1189_v12 = vpop.xlane.xlu1 %1188 }
 0x7ba   :  { %3459 = vpow2.f32 %v1211_v10  ;;  %v1202_v13 = vsub.f32 %v4030_v30, %v1186_v11  ;;  %v1203_v15 = vsub.f32 %v1160_v24, %v1189_v12 }
 0x7bc   :  { %v1213_v16 = vmul.f32 1.442695, %v1202_v13  ;;  %v1215_v29 = vmul.f32 1.442695, %v1203_v15 }
 0x7bd   :  { %v1195_v32 = vpop.xlane.xlu1 %1194  ;;  %v1192_v31 = vpop.xlane.xlu0 %1191 }
 0x7be   :  { %3461 = vpow2.f32 %v1213_v16  ;;  %v1205_v19 = vsub.f32 %v4035_v23, %v1195_v32  ;;  %v1204_v22 = vsub.f32 %v1163_v8, %v1192_v31 }
 0x7bf   :  { %3463 = vpow2.f32 %v1215_v29 }
 0x7c0   :  { %v4089_v33 = vpop.eup %3455  ;;  %v1219_v17 = vmul.f32 1.442695, %v1205_v19  ;;  %v1217_v34 = vmul.f32 1.442695, %v1204_v22 }
 0x7c1   :  { %v1425_v14 = vpop.xlane.xlu1 %1424  ;;  %v1198_v36 = vpop.xlane.xlu0 %1197  ;;  %v1223_v43 = vsel %vm674_vm1, %v4089_v33, 0.0 }
 0x7c2   :  { %v4093_v30 = vpop.eup %3457  ;;  %3465 = vpow2.f32 %v1219_v17  ;;  %v1447_v24 = vsub.f32 %v4047_v41, %v1425_v14  ;;  %v1206_v44 = vsub.f32 %v4037_v25, %v1198_v36  ;;  %1224 = vadd.xlane.f32.xlu1 %v1223_v43 }
 0x7c3   :  { %3467 = vpow2.f32 %v1217_v34  ;;  %v1226_v23 = vsel %vm674_vm1, %v4093_v30, 0.0 }
 0x7c4   :  { %v4099_v8 = vpop.eup %3459  ;;  %v1455_v20 = vmul.f32 1.442695, %v1447_v24  ;;  %v1221_v27 = vmul.f32 1.442695, %v1206_v44  ;;  %1227 = vadd.xlane.f32.xlu0 %v1226_v23 }
 0x7c5   :  { %v1431_v35 = vpop.xlane.xlu1 %1430  ;;  %v1428_v37 = vpop.xlane.xlu0 %1427  ;;  %v1229_v40 = vsel %vm674_vm1, %v4099_v8, 0.0 }
 0x7c6   :  { %3469 = vpow2.f32 %v1455_v20  ;;  %v1449_v41 = vsub.f32 %v4045_v38, %v1431_v35  ;;  %v1448_v25 = vsub.f32 %v4055_v45, %v1428_v37  ;;  %1230 = vadd.xlane.f32.xlu1 %v1229_v40 }
 0x7c7   :  { %3471 = vpow2.f32 %v1221_v27 }
 0x7c8   :  { %v4105_v51 = vpop.eup %3461  ;;  %v1459_v53 = vmul.f32 1.442695, %v1449_v41  ;;  %v1457_v55 = vmul.f32 1.442695, %v1448_v25  ;;  %v3104_v41 = vpop.f32.mrb[40].mxu0 }
 0x7c9   :  { %v4107_v56 = vpop.eup %3463  ;;  %v1437_v59 = vpop.xlane.xlu1 %1436  ;;  %v1232_v0 = vsel %vm674_vm1, %v4105_v51, 0.0 }
 0x7ca   :  { %v1434_v61 = vpop.xlane.xlu0 %1433  ;;  %3473 = vpow2.f32 %v1459_v53  ;;  %v1451_v1 = vsub.f32 %v4063_v49, %v1437_v59  ;;  %v1235_v45 = vsel %vm674_vm1, %v4107_v56, 0.0  ;;  %1233 = vadd.xlane.f32.xlu0 %v1232_v0  ;;  %v526_v25 = vpop.f32.mrb[41].mxu0 }
 0x7cb   :  { %v1450_v38 = vsub.f32 %v4049_v42, %v1434_v61  ;;  %3475 = vpow2.f32 %v1457_v55  ;;  %1236 = vadd.xlane.f32.xlu1 %v1235_v45  ;;  %v3105_v53 = vpop.f32.mrb[42].mxu0 }
 0x7cc   :  { %v4115_v2 = vpop.eup %3465  ;;  %v1463_v5 = vmul.f32 1.442695, %v1451_v1  ;;  %v4174_v55 = vpack.c.bf16 %v3105_v53, %v3104_v41 }
 0x7cd   :  { %v1461_v7 = vmul.f32 1.442695, %v1450_v38  ;;  %v4117_v9 = vpop.eup %3467  ;;  %v1443_v10 = vpop.xlane.xlu1 %1442  ;;  %v1241_v12 = vsel %vm674_vm1, %v4115_v2, 0.0 }
 0x7ce   :  { %v1440_v11 = vpop.xlane.xlu0 %1439  ;;  %3477 = vpow2.f32 %v1463_v5  ;;  %v1453_v42 = vsub.f32 %v4061_v47, %v1443_v10  ;;  %v1238_v13 = vsel %vm674_vm1, %v4117_v9, 0.0 }
 0x7cf   :  { %v1452_v49 = vsub.f32 %v4071_v39, %v1440_v11  ;;  %3479 = vpow2.f32 %v1461_v7  ;;  %1242 = vadd.xlane.f32.xlu1 %v1241_v12  ;;  %1239 = vadd.xlane.f32.xlu0 %v1238_v13 }
 0x7d0   :  { %v4125_v15 = vpop.eup %3469  ;;  %v1467_v16 = vmul.f32 1.442695, %v1453_v42 }
 0x7d1   :  { %v1465_v29 = vmul.f32 1.442695, %v1452_v49  ;;  %v4127_v32 = vpop.eup %3471  ;;  %v1471_v19 = vsel %vm674_vm1, %v4125_v15, 0.0 }
 0x7d2   :  { %v1446_v31 = vpop.xlane.xlu0 %1445  ;;  %3481 = vpow2.f32 %v1467_v16  ;;  %v1244_v39 = vsel %vm674_vm1, %v4127_v32, 0.0 }
 0x7d3   :  { %v1454_v47 = vsub.f32 %v4065_v50, %v1446_v31  ;;  %3483 = vpow2.f32 %v1465_v29  ;;  %1472 = vadd.xlane.f32.xlu1 %v1471_v19  ;;  %1245 = vadd.xlane.f32.xlu0 %v1244_v39 }
 0x7d4   :  { %v4134_v22 = vpop.eup %3473 }
 0x7d5   :  { %v1469_v17 = vmul.f32 1.442695, %v1454_v47  ;;  %v4136_v34 = vpop.eup %3475  ;;  %v1477_v14 = vsel %vm674_vm1, %v4134_v22, 0.0 }
 0x7d6   :  { %v1474_v36 = vsel %vm674_vm1, %v4136_v34, 0.0 }
 0x7d7   :  { %3485 = vpow2.f32 %v1469_v17  ;;  %1478 = vadd.xlane.f32.xlu1 %v1477_v14  ;;  %1475 = vadd.xlane.f32.xlu0 %v1474_v36 }
 0x7d8   :  { %v4142_v50 = vpop.eup %3477 }
 0x7d9   :  { %v4144_v43 = vpop.eup %3479  ;;  %v1483_v24 = vsel %vm674_vm1, %v4142_v50, 0.0 }
 0x7da   :  { %v1480_v44 = vsel %vm674_vm1, %v4144_v43, 0.0 }
 0x7db   :  { %1484 = vadd.xlane.f32.xlu1 %v1483_v24  ;;  %1481 = vadd.xlane.f32.xlu0 %v1480_v44 }
 0x7dc   :  { %v4150_v23 = vpop.eup %3481 }
 0x7dd   :  { %v4152_v20 = vpop.eup %3483  ;;  %v1489_v27 = vsel %vm674_vm1, %v4150_v23, 0.0 }
 0x7de   :  { %v1486_v35 = vsel %vm674_vm1, %v4152_v20, 0.0 }
 0x7df   :  { %1490 = vadd.xlane.f32.xlu1 %v1489_v27  ;;  %1487 = vadd.xlane.f32.xlu0 %v1486_v35 }
 0x7e1   :  { %v4158_v37 = vpop.eup %3485 }
 0x7e2   :  { %v1492_v40 = vsel %vm674_vm1, %v4158_v37, 0.0 }
 0x7e3   :  { %1493 = vadd.xlane.f32.xlu0 %v1492_v40 }
 0x7f0   :  { %1588 = vrot.lane.b32.xlu1 %v3774_v28, %s3673_s21  ;;  %v529_v28 = vpop.f32.mrb[43].mxu0 }
 0x7f1   :  { %v4176_v59 = vpack.c.bf16 %v529_v28, %v526_v25 }
 0x7f3   :  { %3178 = vmatprep.mubr.msk.bf16.mxu0 %vm674_vm1, %v4176_v59 }
 0x7f4   :  { %1871 = vrot.lane.b32.xlu1 %v3878_v48, %s3673_s21 }
 0x7f8   :  { %1873 = vrot.lane.b32.xlu1 %v3876_v46, %s3673_s21 }
 0x7f9   :  { %1590 = vrot.lane.b32.xlu0 %v3772_v26, %s3673_s21  ;;  %v3108_v26 = vpop.f32.mrb[44].mxu0 }
 0x7fa   :  { %v542_v46 = vpop.f32.mrb[45].mxu0 }
 0x7fb   :  { %v3109_v48 = vpop.f32.mrb[46].mxu0 }
 0x7fc   :  { %1863 = vrot.lane.b32.xlu1 %v3838_v58, %s3672_s16  ;;  %v4184_v61 = vpack.c.bf16 %v3109_v48, %v3108_v26  ;;  %v545_v0 = vpop.f32.mrb[47].mxu0 }
 0x7fd   :  { %1861 = vrot.lane.b32.xlu0 %v3836_v57, %s3672_s16  ;;  %v4186_v1 = vpack.c.bf16 %v545_v0, %v542_v46 }
 0x800   :  { %1867 = vrot.lane.b32.xlu1 %v3842_v4, %s3672_s16 }
 0x801   :  { %1865 = vrot.lane.b32.xlu0 %v3840_v62, %s3672_s16 }
 0x84f   :  { %v1225_v38 = vpop.xlane.xlu1 %1224 }
 0x850   :  { %3487 = vrcp.f32 %v1225_v38 }
 0x851   :  { %v1228_v45 = vpop.xlane.xlu0 %1227 }
 0x852   :  { %3489 = vrcp.f32 %v1228_v45 }
 0x853   :  { %v1231_v5 = vpop.xlane.xlu1 %1230 }
 0x854   :  { %3491 = vrcp.f32 %v1231_v5 }
 0x857   :  { %v1234_v7 = vpop.xlane.xlu0 %1233 }
 0x858   :  { %v1237_v10 = vpop.xlane.xlu1 %1236  ;;  %3493 = vrcp.f32 %v1234_v7 }
 0x859   :  { %3495 = vrcp.f32 %v1237_v10 }
 0x85a   :  { %v3488_v11 = vpop.eup %3487 }
 0x85b   :  { %v1255_v13 = vmul.f32 %v3488_v11, %v4089_v33 }
 0x85c   :  { %v3490_v12 = vpop.eup %3489  ;;  %v1243_v42 = vpop.xlane.xlu1 %1242 }
 0x85d   :  { %v1240_v49 = vpop.xlane.xlu0 %1239  ;;  %v1256_v16 = vmul.f32 %v3490_v12, %v4093_v30 }
 0x85e   :  { %3497 = vrcp.f32 %v1240_v49  ;;  %v3492_v31 = vpop.eup %3491 }
 0x85f   :  { %v1263_v29 = vpack.c.bf16 %v1256_v16, %v1255_v13  ;;  %3499 = vrcp.f32 %v1243_v42  ;;  %v1257_v14 = vmul.f32 %v3492_v31, %v4099_v8 }
 0x860   :  { %v1473_v19 = vpop.xlane.xlu1 %1472 }
 0x861   :  { %v1246_v47 = vpop.xlane.xlu0 %1245  ;;  %3330 = vmatprep.subr.msk.bf16.mxu0 %vm674_vm1, %v1263_v29  ;;  %v1274_v39 = vsel %vm674_vm1, %v1263_v29, 0 }
 0x862   :  { %v3494_v17 = vpop.eup %3493  ;;  %3501 = vrcp.f32 %v1246_v47  ;;  %3171 = vmatpush3.bf16.xpose.msra.mxu0 %v1274_v39 }
 0x863   :  { %v1258_v36 = vmul.f32 %v3494_v17, %v4105_v51  ;;  %v3496_v44 = vpop.eup %3495 }
 0x864   :  { %v1479_v33 = vpop.xlane.xlu1 %1478  ;;  %v1259_v25 = vmul.f32 %v3496_v44, %v4107_v56 }
 0x865   :  { %v1476_v24 = vpop.xlane.xlu0 %1475  ;;  %v1264_v30 = vpack.c.bf16 %v1258_v36, %v1257_v14 }
 0x866   :  { %3503 = vrcp.f32 %v1476_v24 }
 0x867   :  { %3331 = vmatprep.subr.msk.bf16.mxu0 %vm674_vm1, %v1264_v30  ;;  %v1277_v41 = vsel %vm674_vm1, %v1264_v30, 0  ;;  %3505 = vrcp.f32 %v1473_v19 }
 0x868   :  { %v3498_v27 = vpop.eup %3497  ;;  %v1485_v35 = vpop.xlane.xlu1 %1484 }
 0x869   :  { %v1482_v40 = vpop.xlane.xlu0 %1481  ;;  %v1260_v53 = vmul.f32 %v3498_v27, %v4117_v9  ;;  %v3500_v8 = vpop.eup %3499 }
 0x86a   :  { %3173 = vmatpush3.bf16.xpose.msra.mxu0 %v1277_v41  ;;  %v1261_v0 = vmul.f32 %v3500_v8, %v4115_v2  ;;  %3507 = vrcp.f32 %v1482_v40 }
 0x86b   :  { %v1265_v51 = vpack.c.bf16 %v1260_v53, %v1259_v25  ;;  %3509 = vrcp.f32 %v1479_v33 }
 0x86c   :  { %v3502_v28 = vpop.eup %3501  ;;  %v1491_v26 = vpop.xlane.xlu1 %1490 }
 0x86d   :  { %v1488_v46 = vpop.xlane.xlu0 %1487  ;;  %3332 = vmatprep.subr.msk.bf16.mxu0 %vm674_vm1, %v1265_v51  ;;  %v1262_v48 = vmul.f32 %v3502_v28, %v4127_v32  ;;  %v1280_v56 = vsel %vm674_vm1, %v1265_v51, 0 }
 0x86e   :  { %3511 = vrcp.f32 %v1488_v46 }
 0x86f   :  { %v1266_v9 = vpack.c.bf16 %v1262_v48, %v1261_v0  ;;  %3513 = vrcp.f32 %v1485_v35 }
 0x870   :  { %v1589_v38 = vpop.permute.xlu1 %1588  ;;  %v3504_v5 = vpop.eup %3503 }
 0x871   :  { %v1494_v45 = vpop.xlane.xlu0 %1493  ;;  %3206 = vmatprep.subr.bf16.mxu1 %v1589_v38  ;;  %v3506_v7 = vpop.eup %3505  ;;  %v1504_v32 = vmul.f32 %v3504_v5, %v4136_v34  ;;  %v1283_v11 = vsel %vm674_vm1, %v1266_v9, 0 }
 0x872   :  { %3207 = vmatpush3.bf16.msra.mxu1 %v1589_v38  ;;  %3175 = vmatpush3.bf16.xpose.msra.mxu0 %v1280_v56  ;;  %v1503_v2 = vmul.f32 %v3506_v7, %v4125_v15  ;;  %3515 = vrcp.f32 %v1494_v45 }
 0x873   :  { %3333 = vmatprep.subr.msk.bf16.mxu0 %vm674_vm1, %v1266_v9  ;;  %3517 = vrcp.f32 %v1491_v26 }
 0x874   :  { %v1511_v12 = vpack.c.bf16 %v1504_v32, %v1503_v2  ;;  %v3508_v42 = vpop.eup %3507 }
 0x875   :  { %v1591_v10 = vpop.permute.xlu0 %1590  ;;  %v3510_v49 = vpop.eup %3509  ;;  %v1506_v34 = vmul.f32 %v3508_v42, %v4144_v43 }
 0x876   :  { %3208 = vmatprep.subr.bf16.mxu1 %v1591_v10  ;;  %v1505_v15 = vmul.f32 %v3510_v49, %v4134_v22  ;;  %v1522_v13 = vsel %vm674_vm1, %v1511_v12, 0 }
 0x877   :  { %3209 = vmatpush3.bf16.msra.mxu1 %v1591_v10 }
 0x878   :  { %v1512_v16 = vpack.c.bf16 %v1506_v34, %v1505_v15  ;;  %v3512_v29 = vpop.eup %3511 }
 0x879   :  { %v3514_v43 = vpop.eup %3513  ;;  %v1508_v22 = vmul.f32 %v3512_v29, %v4152_v20  ;;  %v1872_v20 = vpop.permute.xlu1 %1871 }
 0x87a   :  { %3211 = vmatmul.mubr.msk.bf16.vlgmr.msra.gmra.mrb[40].mxu1 %vm259_vm0, %v3838_v58  ;;  %3177 = vmatpush3.bf16.xpose.msra.mxu0 %v1283_v11  ;;  %v1507_v31 = vmul.f32 %v3514_v43, %v4142_v50  ;;  %v1525_v19 = vsel %vm674_vm1, %v1512_v16, 0  ;;  %v1862_v30 = vpop.permute.xlu0 %1861 }
 0x87b   :  { %3214 = vmatprep.mubr.msk.bf16.mxu1 %vm259_vm0, %v3840_v62  ;;  %3334 = vmatprep.subr.msk.bf16.mxu0 %vm674_vm1, %v1511_v12 }
 0x87c   :  { %v1513_v47 = vpack.c.bf16 %v1508_v22, %v1507_v31  ;;  %v3516_v39 = vpop.eup %3515 }
 0x87d   :  { %v3518_v17 = vpop.eup %3517  ;;  %v1510_v14 = vmul.f32 %v3516_v39, %v4158_v37  ;;  %v1874_v44 = vpop.permute.xlu1 %1873 }
 0x87e   :  { %v1509_v36 = vmul.f32 %v3518_v17, %v4150_v23  ;;  %v1528_v33 = vsel %vm674_vm1, %v1513_v47, 0  ;;  %v1866_v37 = vpop.permute.xlu0 %1865 }
 0x880   :  { %v1514_v24 = vpack.c.bf16 %v1510_v14, %v1509_v36 }
 0x881   :  { %3179 = vmatmul.mubr.msk.bf16.vlgmr.msra.gmra.mrb[48].mxu0 %vm674_vm1, %v4174_v55  ;;  %v1864_v23 = vpop.permute.xlu1 %1863 }
 0x882   :  { %3215 = vmatmul.mubr.msk.bf16.gmra.mrb[44].mxu1 %vm259_vm0, %v3842_v4  ;;  %3195 = vmatpush3.bf16.xpose.msra.mxu0 %v1522_v13  ;;  %v1531_v50 = vsel %vm674_vm1, %v1514_v24, 0 }
 0x883   :  { %3202 = vmatprep.mubr.msk.bf16.mxu0 %vm674_vm1, %v4186_v1  ;;  %3335 = vmatprep.subr.msk.bf16.mxu0 %vm674_vm1, %v1512_v16 }
 0x885   :  { %v1868_v27 = vpop.permute.xlu1 %1867 }
 0x88a   :  { %3197 = vmatpush3.bf16.xpose.msra.mxu0 %v1525_v19 }
 0x88b   :  { %3336 = vmatprep.subr.msk.bf16.mxu0 %vm674_vm1, %v1513_v47 }
 0x892   :  { %3199 = vmatpush3.bf16.xpose.msra.mxu0 %v1528_v33 }
 0x893   :  { %3337 = vmatprep.subr.msk.bf16.mxu0 %vm674_vm1, %v1514_v24 }
 0x89a   :  { %3201 = vmatpush3.bf16.xpose.msra.mxu0 %v1531_v50 }
 0x89b   :  { %3230 = vmatprep.subr.bf16.mxu0 %v1872_v20 }
 0x8a1   :  { %3203 = vmatmul.mubr.msk.bf16.vlgmr.msra.gmra.mrb[52].mxu0 %vm674_vm1, %v4184_v61 }
 0x8a2   :  { %3231 = vmatpush3.bf16.msra.mxu0 %v1872_v20  ;;  %3234 = vmatprep.mubr.msk.bf16.mxu0 %vm259_vm0, %v1862_v30 }
 0x8a3   :  { %3232 = vmatprep.subr.bf16.mxu0 %v1874_v44 }
 0x8a6   :  { %3233 = vmatpush3.bf16.msra.mxu0 %v1874_v44 }
 0x8a9   :  { %3235 = vmatmul.mubr.msk.bf16.vlgmr.msra.gmra.mrb[56].mxu0 %vm259_vm0, %v1864_v23 }
 0x8aa   :  { %3238 = vmatprep.mubr.msk.bf16.mxu0 %vm259_vm0, %v1866_v37 }
 0x8b1   :  { %3239 = vmatmul.mubr.msk.bf16.gmra.mrb[60].mxu0 %vm259_vm0, %v1868_v27 }
 0x94d   :  { %v4236_v35 = vpop.f32.mrb[40].mxu1 }
 0x94e   :  { %v4238_v40 = vpop.f32.mrb[41].mxu1  ;;  %v1677_v51 = vsel %vm674_vm1, %v4236_v35, -inf }
 0x94f   :  { %v4240_v41 = vpop.f32.mrb[42].mxu1  ;;  %v1671_v25 = vsel %vm674_vm1, %v4238_v40, -inf }
 0x950   :  { %1672 = vmax.xlane.f32.xlu0 %v1671_v25  ;;  %v4244_v53 = vpop.f32.mrb[43].mxu1  ;;  %v1680_v38 = vsel %vm674_vm1, %v4240_v41, -inf }
 0x951   :  { %v1674_v8 = vsel %vm674_vm1, %v4244_v53, -inf }
 0x952   :  { %1675 = vmax.xlane.f32.xlu1 %v1674_v8 }
 0x954   :  { %1678 = vmax.xlane.f32.xlu0 %v1677_v51  ;;  %v3180_v26 = vpop.f32.mrb[48].mxu0 }
 0x955   :  { %v4250_v28 = vpop.f32.mrb[44].mxu1  ;;  %1336 = vst.msk [vmem:[#allocation2 + $0x50] sm:$0xff] %vm674_vm1, %v3180_v26  ;;  %v1319_v48 = vpop.f32.mrb[49].mxu0 }
 0x956   :  { %v4252_v46 = vpop.f32.mrb[45].mxu1  ;;  %1334 = vst.msk [vmem:[#allocation2 + $0x40] sm:$0xff] %vm674_vm1, %v1319_v48  ;;  %v3181_v45 = vpop.f32.mrb[50].mxu0  ;;  %v1689_v47 = vsel %vm674_vm1, %v4250_v28, -inf }
 0x957   :  { %v4255_v0 = vpop.f32.mrb[46].mxu1  ;;  %1337 = vst.msk [vmem:[#allocation2 + $0x58] sm:$0xff] %vm674_vm1, %v3181_v45  ;;  %v1322_v9 = vpop.f32.mrb[51].mxu0  ;;  %v1683_v15 = vsel %vm674_vm1, %v4252_v46, -inf }
 0x958   :  { %1681 = vmax.xlane.f32.xlu0 %v1680_v38  ;;  %v4260_v56 = vpop.f32.mrb[47].mxu1  ;;  %1335 = vst.msk [vmem:[#allocation2 + $0x48] sm:$0xff] %vm674_vm1, %v1322_v9  ;;  %v1692_v39 = vsel %vm674_vm1, %v4255_v0, -inf }
 0x959   :  { %v1686_v16 = vsel %vm674_vm1, %v4260_v56, -inf }
 0x974   :  { %v3204_v5 = vpop.f32.mrb[52].mxu0 }
 0x975   :  { %1584 = vst.msk [vmem:[#allocation2 + $0x70] sm:$0xff] %vm674_vm1, %v3204_v5  ;;  %v1567_v7 = vpop.f32.mrb[53].mxu0 }
 0x976   :  { %1582 = vst.msk [vmem:[#allocation2 + $0x60] sm:$0xff] %vm674_vm1, %v1567_v7  ;;  %v3205_v10 = vpop.f32.mrb[54].mxu0 }
 0x977   :  { %1585 = vst.msk [vmem:[#allocation2 + $0x78] sm:$0xff] %vm674_vm1, %v3205_v10  ;;  %v1570_v32 = vpop.f32.mrb[55].mxu0 }
 0x978   :  { %1583 = vst.msk [vmem:[#allocation2 + $0x68] sm:$0xff] %vm674_vm1, %v1570_v32 }
 0x97c   :  { %v4268_v2 = vpop.f32.mrb[56].mxu0 }
 0x97d   :  { %v4270_v11 = vpop.f32.mrb[57].mxu0  ;;  %v1960_v22 = vsel %vm674_vm1, %v4268_v2, -inf }
 0x97e   :  { %v4272_v12 = vpop.f32.mrb[58].mxu0  ;;  %v1954_v42 = vsel %vm674_vm1, %v4270_v11, -inf }
 0x97f   :  { %1955 = vmax.xlane.f32.xlu1 %v1954_v42  ;;  %v1926_v49 = vpop.f32.mrb[59].mxu0  ;;  %v1963_v19 = vsel %vm674_vm1, %v4272_v12, -inf }
 0x980   :  { %v1957_v34 = vsel %vm674_vm1, %v1926_v49, -inf }
 0x981   :  { %1958 = vmax.xlane.f32.xlu0 %v1957_v34 }
 0x983   :  { %1684 = vmax.xlane.f32.xlu1 %v1683_v15 }
 0x984   :  { %v4279_v13 = vpop.f32.mrb[60].mxu0 }
 0x985   :  { %1687 = vmax.xlane.f32.xlu0 %v1686_v16  ;;  %v4283_v29 = vpop.f32.mrb[61].mxu0  ;;  %v1972_v36 = vsel %vm674_vm1, %v4279_v13, -inf }
 0x986   :  { %v4285_v43 = vpop.f32.mrb[62].mxu0  ;;  %v1966_v17 = vsel %vm674_vm1, %v4283_v29, -inf }
 0x987   :  { %1961 = vmax.xlane.f32.xlu1 %v1960_v22  ;;  %v4289_v31 = vpop.f32.mrb[63].mxu0  ;;  %v1975_v33 = vsel %vm674_vm1, %v4285_v43, -inf }
 0x988   :  { %v1969_v14 = vsel %vm674_vm1, %v4289_v31, -inf }
 0x989   :  { %1964 = vmax.xlane.f32.xlu0 %v1963_v19 }
 0x98b   :  { %1690 = vmax.xlane.f32.xlu1 %v1689_v47 }
 0x98d   :  { %1693 = vmax.xlane.f32.xlu0 %v1692_v39 }
 0x98f   :  { %1967 = vmax.xlane.f32.xlu1 %v1966_v17 }
 0x991   :  { %1970 = vmax.xlane.f32.xlu0 %v1969_v14 }
 0x993   :  { %1973 = vmax.xlane.f32.xlu1 %v1972_v36 }
 0x995   :  { %1976 = vmax.xlane.f32.xlu0 %v1975_v33 }
 0x9dd   :  { %v1673_v24 = vpop.xlane.xlu0 %1672 }
 0x9de   :  { %v1695_v50 = vsub.f32 %v4238_v40, %v1673_v24 }
 0x9df   :  { %v1676_v20 = vpop.xlane.xlu1 %1675 }
 0x9e0   :  { %v1703_v30 = vmul.f32 1.442695, %v1695_v50  ;;  %v1696_v44 = vsub.f32 %v4244_v53, %v1676_v20 }
 0x9e1   :  { %v1679_v23 = vpop.xlane.xlu0 %1678 }
 0x9e2   :  { %3519 = vpow2.f32 %v1703_v30  ;;  %v1705_v37 = vmul.f32 1.442695, %v1696_v44  ;;  %v1697_v27 = vsub.f32 %v4236_v35, %v1679_v23 }
 0x9e4   :  { %3521 = vpow2.f32 %v1705_v37  ;;  %v1707_v25 = vmul.f32 1.442695, %v1697_v27 }
 0x9e5   :  { %v1682_v8 = vpop.xlane.xlu0 %1681 }
 0x9e6   :  { %3523 = vpow2.f32 %v1707_v25  ;;  %v1698_v51 = vsub.f32 %v4240_v41, %v1682_v8 }
 0x9e8   :  { %v1709_v26 = vmul.f32 1.442695, %v1698_v51 }
 0x9ea   :  { %3525 = vpow2.f32 %v1709_v26 }
 0x9ec   :  { %v4309_v48 = vpop.eup %3519 }
 0x9ed   :  { %v1719_v40 = vsel %vm674_vm1, %v4309_v48, 0.0 }
 0x9ee   :  { %v4313_v38 = vpop.eup %3521  ;;  %1720 = vadd.xlane.f32.xlu1 %v1719_v40 }
 0x9ef   :  { %v1722_v53 = vsel %vm674_vm1, %v4313_v38, 0.0 }
 0x9f0   :  { %v4317_v35 = vpop.eup %3523  ;;  %1723 = vadd.xlane.f32.xlu0 %v1722_v53 }
 0x9f1   :  { %v1725_v45 = vsel %vm674_vm1, %v4317_v35, 0.0 }
 0x9f2   :  { %1726 = vadd.xlane.f32.xlu1 %v1725_v45 }
 0x9f4   :  { %v4321_v41 = vpop.eup %3525 }
 0x9f5   :  { %v1728_v9 = vsel %vm674_vm1, %v4321_v41, 0.0 }
 0x9f6   :  { %1729 = vadd.xlane.f32.xlu0 %v1728_v9 }
 0xa0c   :  { %v1956_v5 = vpop.xlane.xlu1 %1955 }
 0xa0d   :  { %v1978_v7 = vsub.f32 %v4270_v11, %v1956_v5 }
 0xa0e   :  { %v1959_v10 = vpop.xlane.xlu0 %1958 }
 0xa0f   :  { %v1979_v32 = vsub.f32 %v1926_v49, %v1959_v10  ;;  %v1986_v16 = vmul.f32 1.442695, %v1978_v7 }
 0xa10   :  { %v1685_v42 = vpop.xlane.xlu1 %1684 }
 0xa11   :  { %v1988_v34 = vmul.f32 1.442695, %v1979_v32  ;;  %v1699_v15 = vsub.f32 %v4252_v46, %v1685_v42 }
 0xa12   :  { %v1688_v22 = vpop.xlane.xlu0 %1687 }
 0xa13   :  { %3527 = vpow2.f32 %v1988_v34  ;;  %v1711_v19 = vmul.f32 1.442695, %v1699_v15  ;;  %v1700_v47 = vsub.f32 %v4260_v56, %v1688_v22 }
 0xa14   :  { %v1962_v39 = vpop.xlane.xlu1 %1961 }
 0xa15   :  { %3529 = vpow2.f32 %v1711_v19  ;;  %v1713_v17 = vmul.f32 1.442695, %v1700_v47  ;;  %v1980_v14 = vsub.f32 %v4268_v2, %v1962_v39 }
 0xa16   :  { %3531 = vpow2.f32 %v1986_v16  ;;  %v1965_v36 = vpop.xlane.xlu0 %1964 }
 0xa17   :  { %3533 = vpow2.f32 %v1713_v17  ;;  %v1990_v11 = vmul.f32 1.442695, %v1980_v14  ;;  %v1981_v49 = vsub.f32 %v4272_v12, %v1965_v36 }
 0xa18   :  { %v1691_v33 = vpop.xlane.xlu1 %1690 }
 0xa19   :  { %v1992_v24 = vmul.f32 1.442695, %v1981_v49  ;;  %v1701_v46 = vsub.f32 %v4250_v28, %v1691_v33  ;;  %3535 = vpow2.f32 %v1990_v11 }
 0xa1a   :  { %v1694_v50 = vpop.xlane.xlu0 %1693 }
 0xa1b   :  { %3537 = vpow2.f32 %v1992_v24  ;;  %v1715_v20 = vmul.f32 1.442695, %v1701_v46  ;;  %v1702_v56 = vsub.f32 %v4255_v0, %v1694_v50 }
 0xa1c   :  { %v1968_v30 = vpop.xlane.xlu1 %1967 }
 0xa1d   :  { %v4332_v44 = vpop.eup %3527  ;;  %v1717_v2 = vmul.f32 1.442695, %v1702_v56  ;;  %3539 = vpow2.f32 %v1715_v20  ;;  %v1982_v23 = vsub.f32 %v4283_v29, %v1968_v30 }
 0xa1e   :  { %v1971_v37 = vpop.xlane.xlu0 %1970  ;;  %v2005_v12 = vsel %vm674_vm1, %v4332_v44, 0.0 }
 0xa1f   :  { %v4337_v27 = vpop.eup %3529  ;;  %3541 = vpow2.f32 %v1717_v2  ;;  %v1983_v28 = vsub.f32 %v4289_v31, %v1971_v37  ;;  %2006 = vadd.xlane.f32.xlu0 %v2005_v12  ;;  %v1994_v40 = vmul.f32 1.442695, %v1982_v23 }
 0xa20   :  { %v4340_v25 = vpop.eup %3531  ;;  %v1974_v0 = vpop.xlane.xlu1 %1973  ;;  %v1731_v8 = vsel %vm674_vm1, %v4337_v27, 0.0 }
 0xa21   :  { %v4344_v51 = vpop.eup %3533  ;;  %v1996_v26 = vmul.f32 1.442695, %v1983_v28  ;;  %v1984_v29 = vsub.f32 %v4279_v13, %v1974_v0  ;;  %1732 = vadd.xlane.f32.xlu1 %v1731_v8  ;;  %v2002_v7 = vsel %vm674_vm1, %v4340_v25, 0.0 }
 0xa22   :  { %v1977_v53 = vpop.xlane.xlu0 %1976  ;;  %v1734_v45 = vsel %vm674_vm1, %v4344_v51, 0.0 }
 0xa23   :  { %3543 = vpow2.f32 %v1996_v26  ;;  %v1998_v31 = vmul.f32 1.442695, %v1984_v29  ;;  %v1985_v9 = vsub.f32 %v4285_v43, %v1977_v53  ;;  %1735 = vadd.xlane.f32.xlu0 %v1734_v45  ;;  %v4350_v5 = vpop.eup %3535 }
 0xa24   :  { %v2008_v43 = vsel %vm674_vm1, %v4350_v5, 0.0 }
 0xa25   :  { %v4354_v10 = vpop.eup %3537  ;;  %3545 = vpow2.f32 %v1998_v31  ;;  %v2000_v13 = vmul.f32 1.442695, %v1985_v9  ;;  %2003 = vadd.xlane.f32.xlu1 %v2002_v7 }
 0xa26   :  { %3547 = vpow2.f32 %v1994_v40  ;;  %v2011_v32 = vsel %vm674_vm1, %v4354_v10, 0.0 }
 0xa27   :  { %3549 = vpow2.f32 %v2000_v13  ;;  %2012 = vadd.xlane.f32.xlu0 %v2011_v32  ;;  %v4358_v42 = vpop.eup %3539 }
 0xa28   :  { %v1737_v16 = vsel %vm674_vm1, %v4358_v42, 0.0 }
 0xa29   :  { %v4362_v34 = vpop.eup %3541  ;;  %2009 = vadd.xlane.f32.xlu1 %v2008_v43 }
 0xa2a   :  { %v1740_v15 = vsel %vm674_vm1, %v4362_v34, 0.0 }
 0xa2b   :  { %1741 = vadd.xlane.f32.xlu0 %v1740_v15 }
 0xa2d   :  { %v4368_v22 = vpop.eup %3543  ;;  %1738 = vadd.xlane.f32.xlu1 %v1737_v16 }
 0xa2e   :  { %v2017_v19 = vsel %vm674_vm1, %v4368_v22, 0.0 }
 0xa2f   :  { %v4372_v47 = vpop.eup %3545  ;;  %2018 = vadd.xlane.f32.xlu0 %v2017_v19 }
 0xa30   :  { %v4374_v39 = vpop.eup %3547  ;;  %v2020_v17 = vsel %vm674_vm1, %v4372_v47, 0.0 }
 0xa31   :  { %v4378_v14 = vpop.eup %3549  ;;  %2021 = vadd.xlane.f32.xlu1 %v2020_v17  ;;  %v2014_v11 = vsel %vm674_vm1, %v4374_v39, 0.0 }
 0xa32   :  { %v2023_v36 = vsel %vm674_vm1, %v4378_v14, 0.0 }
 0xa33   :  { %2024 = vadd.xlane.f32.xlu0 %v2023_v36 }
 0xa35   :  { %2015 = vadd.xlane.f32.xlu1 %v2014_v11 }
 0xa46   :  { %1765 = vrot.lane.b32.xlu1 %v3898_v6, %s3673_s21 }
 0xa49   :  { %1767 = vrot.lane.b32.xlu0 %v3896_v3, %s3673_s21 }
 0xa4a   :  { %2149 = vrot.lane.b32.xlu1 %v3884_v54, %s3673_s21 }
 0xa4d   :  { %2048 = vrot.lane.b32.xlu0 %v3983_v21, %s3673_s21 }
 0xa4e   :  { %2151 = vrot.lane.b32.xlu1 %v3882_v52, %s3673_s21 }
 0xa51   :  { %2050 = vrot.lane.b32.xlu0 %v3981_v18, %s3673_s21 }
 0xa52   :  { %2139 = vrot.lane.b32.xlu1 %v3836_v57, %s3673_s21 }
 0xa55   :  { %2427 = vrot.lane.b32.xlu0 %v3894_v63, %s3673_s21 }
 0xa56   :  { %2141 = vrot.lane.b32.xlu1 %v3838_v58, %s3673_s21 }
 0xa59   :  { %2417 = vrot.lane.b32.xlu0 %v3836_v57, %s3674_s22 }
 0xa5a   :  { %2429 = vrot.lane.b32.xlu1 %v3892_v60, %s3673_s21 }
 0xa5d   :  { %2143 = vrot.lane.b32.xlu0 %v3840_v62, %s3673_s21 }
 0xa5e   :  { %2419 = vrot.lane.b32.xlu1 %v3838_v58, %s3674_s22 }
 0xa61   :  { %2421 = vrot.lane.b32.xlu0 %v3840_v62, %s3674_s22 }
 0xa62   :  { %2145 = vrot.lane.b32.xlu1 %v3842_v4, %s3673_s21 }
 0xa66   :  { %2423 = vrot.lane.b32.xlu1 %v3842_v4, %s3674_s22 }
 0xa7b   :  { %v1721_v52 = vpop.xlane.xlu1 %1720 }
 0xa7c   :  { %3551 = vrcp.f32 %v1721_v52 }
 0xa7d   :  { %v1724_v57 = vpop.xlane.xlu0 %1723 }
 0xa7e   :  { %3553 = vrcp.f32 %v1724_v57 }
 0xa7f   :  { %v1727_v54 = vpop.xlane.xlu1 %1726 }
 0xa80   :  { %3555 = vrcp.f32 %v1727_v54 }
 0xa83   :  { %v1730_v60 = vpop.xlane.xlu0 %1729 }
 0xa84   :  { %3557 = vrcp.f32 %v1730_v60 }
 0xa86   :  { %v3552_v63 = vpop.eup %3551 }
 0xa87   :  { %v1751_v58 = vmul.f32 %v3552_v63, %v4309_v48 }
 0xa88   :  { %v3554_v3 = vpop.eup %3553 }
 0xa89   :  { %v1752_v62 = vmul.f32 %v3554_v3, %v4313_v38 }
 0xa8a   :  { %v3556_v18 = vpop.eup %3555 }
 0xa8b   :  { %v1759_v6 = vpack.c.bf16 %v1752_v62, %v1751_v58  ;;  %v1753_v49 = vmul.f32 %v3556_v18, %v4317_v35 }
 0xa8d   :  { %3338 = vmatprep.subr.msk.bf16.mxu1 %vm674_vm1, %v1759_v6  ;;  %v1776_v4 = vsel %vm674_vm1, %v1759_v6, 0 }
 0xa8e   :  { %v3558_v21 = vpop.eup %3557  ;;  %3219 = vmatpush3.bf16.xpose.msra.mxu1 %v1776_v4 }
 0xa8f   :  { %v1754_v33 = vmul.f32 %v3558_v21, %v4321_v41 }
 0xa91   :  { %v1760_v24 = vpack.c.bf16 %v1754_v33, %v1753_v49 }
 0xa93   :  { %3339 = vmatprep.subr.msk.bf16.mxu1 %vm674_vm1, %v1760_v24  ;;  %v1779_v46 = vsel %vm674_vm1, %v1760_v24, 0 }
 0xa96   :  { %3221 = vmatpush3.bf16.xpose.msra.mxu1 %v1779_v46 }
 0xaac   :  { %v2007_v48 = vpop.xlane.xlu0 %2006 }
 0xaae   :  { %v1733_v38 = vpop.xlane.xlu1 %1732 }
 0xaaf   :  { %3559 = vrcp.f32 %v1733_v38 }
 0xab0   :  { %3561 = vrcp.f32 %v2007_v48  ;;  %v1736_v50 = vpop.xlane.xlu0 %1735 }
 0xab1   :  { %3563 = vrcp.f32 %v1736_v50 }
 0xab2   :  { %v2004_v20 = vpop.xlane.xlu1 %2003 }
 0xab3   :  { %3565 = vrcp.f32 %v2004_v20 }
 0xab4   :  { %v2013_v56 = vpop.xlane.xlu0 %2012 }
 0xab5   :  { %3567 = vrcp.f32 %v2013_v56 }
 0xab6   :  { %v2010_v30 = vpop.xlane.xlu1 %2009 }
 0xab7   :  { %3569 = vrcp.f32 %v2010_v30 }
 0xab8   :  { %v1742_v35 = vpop.xlane.xlu0 %1741 }
 0xab9   :  { %v3560_v41 = vpop.eup %3559  ;;  %3571 = vrcp.f32 %v1742_v35 }
 0xaba   :  { %v3562_v2 = vpop.eup %3561  ;;  %v1739_v23 = vpop.xlane.xlu1 %1738  ;;  %v1755_v28 = vmul.f32 %v3560_v41, %v4337_v27 }
 0xabb   :  { %v3564_v37 = vpop.eup %3563  ;;  %3573 = vrcp.f32 %v1739_v23  ;;  %v2035_v53 = vmul.f32 %v3562_v2, %v4332_v44 }
 0xabc   :  { %v2019_v12 = vpop.xlane.xlu0 %2018  ;;  %v1756_v0 = vmul.f32 %v3564_v37, %v4344_v51 }
 0xabd   :  { %v3566_v8 = vpop.eup %3565  ;;  %3575 = vrcp.f32 %v2019_v12 }
 0xabe   :  { %v2022_v26 = vpop.xlane.xlu1 %2021  ;;  %v1761_v29 = vpack.c.bf16 %v1756_v0, %v1755_v28  ;;  %v2034_v40 = vmul.f32 %v3566_v8, %v4340_v25 }
 0xabf   :  { %v3568_v45 = vpop.eup %3567 }
 0xac0   :  { %3340 = vmatprep.subr.msk.bf16.mxu1 %vm674_vm1, %v1761_v29  ;;  %v2025_v31 = vpop.xlane.xlu0 %2024  ;;  %v1782_v9 = vsel %vm674_vm1, %v1761_v29, 0  ;;  %v2042_v7 = vpack.c.bf16 %v2035_v53, %v2034_v40  ;;  %v2037_v44 = vmul.f32 %v3568_v45, %v4354_v10 }
 0xac1   :  { %v3570_v13 = vpop.eup %3569  ;;  %3577 = vrcp.f32 %v2025_v31  ;;  %3223 = vmatpush3.bf16.xpose.msra.mxu1 %v1782_v9 }
 0xac2   :  { %3579 = vrcp.f32 %v2022_v26  ;;  %v2016_v27 = vpop.xlane.xlu1 %2015  ;;  %3342 = vmatprep.subr.msk.bf16.mxu0 %vm674_vm1, %v2042_v7  ;;  %v2059_v51 = vsel %vm674_vm1, %v2042_v7, 0  ;;  %v2036_v25 = vmul.f32 %v3570_v13, %v4350_v5 }
 0xac3   :  { %v3572_v32 = vpop.eup %3571  ;;  %3581 = vrcp.f32 %v2016_v27  ;;  %3243 = vmatpush3.bf16.xpose.msra.mxu0 %v2059_v51 }
 0xac4   :  { %v1768_v43 = vpop.permute.xlu0 %1767  ;;  %v2043_v15 = vpack.c.bf16 %v2037_v44, %v2036_v25  ;;  %v1758_v36 = vmul.f32 %v3572_v32, %v4362_v34 }
 0xac5   :  { %v3574_v16 = vpop.eup %3573 }
 0xac6   :  { %v1766_v19 = vpop.permute.xlu1 %1765  ;;  %3343 = vmatprep.subr.msk.bf16.mxu0 %vm674_vm1, %v2043_v15  ;;  %v1757_v17 = vmul.f32 %v3574_v16, %v4358_v42  ;;  %v2062_v54 = vsel %vm674_vm1, %v2043_v15, 0 }
 0xac7   :  { %3226 = vmatprep.mubr.msk.bf16.mxu1 %vm674_vm1, %v1766_v19  ;;  %v3576_v5 = vpop.eup %3575 }
 0xac8   :  { %v2049_v11 = vpop.permute.xlu0 %2048  ;;  %v1762_v52 = vpack.c.bf16 %v1758_v36, %v1757_v17  ;;  %v2039_v62 = vmul.f32 %v3576_v5, %v4368_v22 }
 0xac9   :  { %3250 = vmatprep.mubr.msk.bf16.mxu0 %vm674_vm1, %v2049_v11 }
 0xaca   :  { %v2150_v10 = vpop.permute.xlu1 %2149  ;;  %3341 = vmatprep.subr.msk.bf16.mxu1 %vm674_vm1, %v1762_v52  ;;  %v1785_v57 = vsel %vm674_vm1, %v1762_v52, 0 }
 0xacb   :  { %v3578_v60 = vpop.eup %3577  ;;  %3225 = vmatpush3.bf16.xpose.msra.mxu1 %v1785_v57  ;;  %3245 = vmatpush3.bf16.xpose.msra.mxu0 %v2062_v54 }
 0xacc   :  { %v3580_v42 = vpop.eup %3579  ;;  %3254 = vmatprep.subr.bf16.mxu1 %v2150_v10  ;;  %v2051_v34 = vpop.permute.xlu0 %2050  ;;  %v2041_v6 = vmul.f32 %v3578_v60, %v4378_v14 }
 0xacd   :  { %v3582_v63 = vpop.eup %3581  ;;  %v2040_v21 = vmul.f32 %v3580_v42, %v4372_v47 }
 0xace   :  { %v2152_v3 = vpop.permute.xlu1 %2151  ;;  %v2038_v58 = vmul.f32 %v3582_v63, %v4374_v39 }
 0xacf   :  { %v2045_v24 = vpack.c.bf16 %v2041_v6, %v2040_v21 }
 0xad0   :  { %v2428_v18 = vpop.permute.xlu0 %2427  ;;  %v2044_v4 = vpack.c.bf16 %v2039_v62, %v2038_v58 }
 0xad1   :  { %v2068_v46 = vsel %vm674_vm1, %v2045_v24, 0 }
 0xad2   :  { %v2140_v49 = vpop.permute.xlu1 %2139  ;;  %3227 = vmatmul.mubr.msk.bf16.vlgmr.msra.gmra.mrb[48].mxu1 %vm674_vm1, %v1768_v43  ;;  %3344 = vmatprep.subr.msk.bf16.mxu0 %vm674_vm1, %v2044_v4  ;;  %v2065_v33 = vsel %vm674_vm1, %v2044_v4, 0 }
 0xad3   :  { %3247 = vmatpush3.bf16.xpose.msra.mxu0 %v2065_v33  ;;  %3255 = vmatpush3.bf16.msra.mxu1 %v2150_v10 }
 0xad4   :  { %3258 = vmatprep.mubr.msk.bf16.mxu1 %vm259_vm0, %v2140_v49  ;;  %3345 = vmatprep.subr.msk.bf16.mxu0 %vm674_vm1, %v2045_v24  ;;  %v2418_v22 = vpop.permute.xlu0 %2417 }
 0xad5   :  { %3256 = vmatprep.subr.bf16.mxu1 %v2152_v3 }
 0xad6   :  { %v2142_v39 = vpop.permute.xlu1 %2141 }
 0xad7   :  { %3257 = vmatpush3.bf16.msra.mxu1 %v2152_v3 }
 0xad8   :  { %v2144_v14 = vpop.permute.xlu0 %2143 }
 0xada   :  { %v2430_v47 = vpop.permute.xlu1 %2429  ;;  %3259 = vmatmul.mubr.msk.bf16.vlgmr.msra.gmra.mrb[52].mxu1 %vm259_vm0, %v2142_v39 }
 0xadb   :  { %3249 = vmatpush3.bf16.xpose.msra.mxu0 %v2068_v46  ;;  %3262 = vmatprep.mubr.msk.bf16.mxu1 %vm259_vm0, %v2144_v14 }
 0xadc   :  { %3278 = vmatprep.subr.bf16.mxu0 %v2428_v18  ;;  %v2422_v50 = vpop.permute.xlu0 %2421 }
 0xade   :  { %v2420_v48 = vpop.permute.xlu1 %2419 }
 0xae2   :  { %v2146_v38 = vpop.permute.xlu1 %2145  ;;  %3251 = vmatmul.mubr.msk.bf16.vlgmr.msra.gmra.mrb[64].mxu0 %vm674_vm1, %v2051_v34 }
 0xae3   :  { %3263 = vmatmul.mubr.msk.bf16.gmra.mrb[56].mxu1 %vm259_vm0, %v2146_v38  ;;  %3279 = vmatpush3.bf16.msra.mxu0 %v2428_v18 }
 0xae4   :  { %3282 = vmatprep.mubr.msk.bf16.mxu0 %vm259_vm0, %v2418_v22  ;;  %3280 = vmatprep.subr.bf16.mxu0 %v2430_v47 }
 0xae6   :  { %v2424_v20 = vpop.permute.xlu1 %2423 }
 0xae7   :  { %3281 = vmatpush3.bf16.msra.mxu0 %v2430_v47 }
 0xaea   :  { %3283 = vmatmul.mubr.msk.bf16.vlgmr.msra.gmra.mrb[68].mxu0 %vm259_vm0, %v2420_v48 }
 0xaeb   :  { %3286 = vmatprep.mubr.msk.bf16.mxu0 %vm259_vm0, %v2422_v50 }
 0xaf2   :  { %3287 = vmatmul.mubr.msk.bf16.gmra.mrb[72].mxu0 %vm259_vm0, %v2424_v20 }
 0xba5   :  { %v4460_v56 = vpop.f32.mrb[48].mxu1 }
 0xba6   :  { %v4462_v30 = vpop.f32.mrb[49].mxu1 }
 0xba7   :  { %v4464_v35 = vpop.f32.mrb[50].mxu1 }
 0xba8   :  { %v4466_v41 = vpop.f32.mrb[51].mxu1 }
 0xbad   :  { %v3260_v2 = vpop.f32.mrb[52].mxu1 }
 0xbae   :  { %v2201_v23 = vpop.f32.mrb[53].mxu1  ;;  %v2238_v8 = vsel %vm674_vm1, %v3260_v2, -inf }
 0xbaf   :  { %v4468_v37 = vpop.f32.mrb[54].mxu1  ;;  %v2232_v12 = vsel %vm674_vm1, %v2201_v23, -inf }
 0xbb0   :  { %2233 = vmax.xlane.f32.xlu0 %v2232_v12  ;;  %v2204_v28 = vpop.f32.mrb[55].mxu1  ;;  %v2241_v31 = vsel %vm674_vm1, %v4468_v37, -inf }
 0xbb1   :  { %v2235_v0 = vsel %vm674_vm1, %v2204_v28, -inf }
 0xbb2   :  { %2236 = vmax.xlane.f32.xlu1 %v2235_v0 }
 0xbb4   :  { %2239 = vmax.xlane.f32.xlu0 %v2238_v8 }
 0xbb5   :  { %v4473_v26 = vpop.f32.mrb[64].mxu0 }
 0xbb6   :  { %v4475_v29 = vpop.f32.mrb[65].mxu0  ;;  %v4477_v40 = vpop.f32.mrb[56].mxu1 }
 0xbb7   :  { %v4479_v53 = vpop.f32.mrb[66].mxu0  ;;  %v4481_v45 = vpop.f32.mrb[57].mxu1  ;;  %v2250_v10 = vsel %vm674_vm1, %v4477_v40, -inf }
 0xbb8   :  { %2242 = vmax.xlane.f32.xlu0 %v2241_v31  ;;  %v4485_v9 = vpop.f32.mrb[67].mxu0  ;;  %v4487_v7 = vpop.f32.mrb[58].mxu1  ;;  %v2244_v15 = vsel %vm674_vm1, %v4481_v45, -inf }
 0xbb9   :  { %v4489_v13 = vpop.f32.mrb[59].mxu1  ;;  %v2253_v57 = vsel %vm674_vm1, %v4487_v7, -inf }
 0xbba   :  { %v2247_v19 = vsel %vm674_vm1, %v4489_v13, -inf }
 0xbbd   :  { %v4491_v27 = vpop.f32.mrb[68].mxu0 }
 0xbbe   :  { %v4493_v51 = vpop.f32.mrb[69].mxu0  ;;  %v2516_v11 = vsel %vm674_vm1, %v4491_v27, -inf }
 0xbbf   :  { %v4495_v25 = vpop.f32.mrb[70].mxu0  ;;  %v2510_v44 = vsel %vm674_vm1, %v4493_v51, -inf }
 0xbc0   :  { %2511 = vmax.xlane.f32.xlu1 %v2510_v44  ;;  %v2482_v32 = vpop.f32.mrb[71].mxu0  ;;  %v2519_v5 = vsel %vm674_vm1, %v4495_v25, -inf }
 0xbc1   :  { %v2513_v43 = vsel %vm674_vm1, %v2482_v32, -inf }
 0xbc2   :  { %2514 = vmax.xlane.f32.xlu0 %v2513_v43 }
 0xbc4   :  { %2245 = vmax.xlane.f32.xlu1 %v2244_v15 }
 0xbc5   :  { %v4502_v16 = vpop.f32.mrb[72].mxu0 }
 0xbc6   :  { %2248 = vmax.xlane.f32.xlu0 %v2247_v19  ;;  %v4506_v17 = vpop.f32.mrb[73].mxu0  ;;  %v2528_v42 = vsel %vm674_vm1, %v4502_v16, -inf }
 0xbc7   :  { %v4508_v36 = vpop.f32.mrb[74].mxu0  ;;  %v2522_v54 = vsel %vm674_vm1, %v4506_v17, -inf }
 0xbc8   :  { %2517 = vmax.xlane.f32.xlu1 %v2516_v11  ;;  %v4512_v52 = vpop.f32.mrb[75].mxu0  ;;  %v2531_v34 = vsel %vm674_vm1, %v4508_v36, -inf }
 0xbc9   :  { %v2525_v60 = vsel %vm674_vm1, %v4512_v52, -inf }
 0xbca   :  { %2520 = vmax.xlane.f32.xlu0 %v2519_v5 }
 0xbcc   :  { %2251 = vmax.xlane.f32.xlu1 %v2250_v10 }
 0xbce   :  { %2254 = vmax.xlane.f32.xlu0 %v2253_v57 }
 0xbd0   :  { %2523 = vmax.xlane.f32.xlu1 %v2522_v54 }
 0xbd2   :  { %2526 = vmax.xlane.f32.xlu0 %v2525_v60 }
 0xbd4   :  { %2529 = vmax.xlane.f32.xlu1 %v2528_v42 }
 0xbd6   :  { %2532 = vmax.xlane.f32.xlu0 %v2531_v34 }
 0xc3d   :  { %v2234_v63 = vpop.xlane.xlu0 %2233 }
 0xc3e   :  { %v2256_v3 = vsub.f32 %v2201_v23, %v2234_v63 }
 0xc3f   :  { %v2237_v58 = vpop.xlane.xlu1 %2236 }
 0xc40   :  { %v2264_v62 = vmul.f32 1.442695, %v2256_v3  ;;  %v2257_v6 = vsub.f32 %v2204_v28, %v2237_v58 }
 0xc41   :  { %v2240_v18 = vpop.xlane.xlu0 %2239 }
 0xc42   :  { %3583 = vpow2.f32 %v2264_v62  ;;  %v2266_v4 = vmul.f32 1.442695, %v2257_v6  ;;  %v2258_v21 = vsub.f32 %v3260_v2, %v2240_v18 }
 0xc44   :  { %3585 = vpow2.f32 %v2266_v4  ;;  %v2268_v49 = vmul.f32 1.442695, %v2258_v21 }
 0xc45   :  { %v2243_v33 = vpop.xlane.xlu0 %2242 }
 0xc46   :  { %3587 = vpow2.f32 %v2268_v49  ;;  %v2259_v24 = vsub.f32 %v4468_v37, %v2243_v33 }
 0xc48   :  { %v2270_v22 = vmul.f32 1.442695, %v2259_v24 }
 0xc4a   :  { %3589 = vpow2.f32 %v2270_v22 }
 0xc4c   :  { %v4529_v39 = vpop.eup %3583 }
 0xc4d   :  { %v2512_v14 = vpop.xlane.xlu1 %2511  ;;  %v2280_v47 = vsel %vm674_vm1, %v4529_v39, 0.0 }
 0xc4e   :  { %v4533_v46 = vpop.eup %3585  ;;  %2281 = vadd.xlane.f32.xlu1 %v2280_v47  ;;  %v2534_v48 = vsub.f32 %v4493_v51, %v2512_v14 }
 0xc4f   :  { %v2515_v38 = vpop.xlane.xlu0 %2514  ;;  %v2283_v50 = vsel %vm674_vm1, %v4533_v46, 0.0 }
 0xc50   :  { %v4538_v20 = vpop.eup %3587  ;;  %v2535_v2 = vsub.f32 %v2482_v32, %v2515_v38  ;;  %2284 = vadd.xlane.f32.xlu0 %v2283_v50  ;;  %v2542_v0 = vmul.f32 1.442695, %v2534_v48 }
 0xc51   :  { %v2246_v23 = vpop.xlane.xlu1 %2245  ;;  %v2286_v37 = vsel %vm674_vm1, %v4538_v20, 0.0 }
 0xc52   :  { %v2544_v12 = vmul.f32 1.442695, %v2535_v2  ;;  %v2260_v28 = vsub.f32 %v4481_v45, %v2246_v23  ;;  %2287 = vadd.xlane.f32.xlu1 %v2286_v37 }
 0xc53   :  { %v2249_v8 = vpop.xlane.xlu0 %2248 }
 0xc54   :  { %v4543_v31 = vpop.eup %3589  ;;  %3591 = vpow2.f32 %v2544_v12  ;;  %v2272_v51 = vmul.f32 1.442695, %v2260_v28  ;;  %v2261_v44 = vsub.f32 %v4489_v13, %v2249_v8 }
 0xc55   :  { %v2518_v43 = vpop.xlane.xlu1 %2517  ;;  %v2289_v32 = vsel %vm674_vm1, %v4543_v31, 0.0 }
 0xc56   :  { %3593 = vpow2.f32 %v2272_v51  ;;  %v2274_v15 = vmul.f32 1.442695, %v2261_v44  ;;  %v2536_v19 = vsub.f32 %v4491_v27, %v2518_v43  ;;  %2290 = vadd.xlane.f32.xlu0 %v2289_v32 }
 0xc57   :  { %3595 = vpow2.f32 %v2542_v0  ;;  %v2521_v45 = vpop.xlane.xlu0 %2520 }
 0xc58   :  { %3597 = vpow2.f32 %v2274_v15  ;;  %v2546_v11 = vmul.f32 1.442695, %v2536_v19  ;;  %v2537_v5 = vsub.f32 %v4495_v25, %v2521_v45 }
 0xc59   :  { %v2252_v10 = vpop.xlane.xlu1 %2251 }
 0xc5a   :  { %v2548_v57 = vmul.f32 1.442695, %v2537_v5  ;;  %v2262_v54 = vsub.f32 %v4477_v40, %v2252_v10  ;;  %3599 = vpow2.f32 %v2546_v11 }
 0xc5b   :  { %v2255_v13 = vpop.xlane.xlu0 %2254 }
 0xc5c   :  { %3601 = vpow2.f32 %v2548_v57  ;;  %v2276_v60 = vmul.f32 1.442695, %v2262_v54  ;;  %v2263_v42 = vsub.f32 %v4487_v7, %v2255_v13 }
 0xc5d   :  { %v2524_v34 = vpop.xlane.xlu1 %2523 }
 0xc5e   :  { %v4552_v63 = vpop.eup %3591  ;;  %v2278_v27 = vmul.f32 1.442695, %v2263_v42  ;;  %v2538_v3 = vsub.f32 %v4506_v17, %v2524_v34  ;;  %3603 = vpow2.f32 %v2276_v60 }
 0xc5f   :  { %v2527_v58 = vpop.xlane.xlu0 %2526  ;;  %v2561_v25 = vsel %vm674_vm1, %v4552_v63, 0.0 }
 0xc60   :  { %v4557_v62 = vpop.eup %3593  ;;  %3605 = vpow2.f32 %v2278_v27  ;;  %v2550_v40 = vmul.f32 1.442695, %v2538_v3  ;;  %v2539_v6 = vsub.f32 %v4512_v52, %v2527_v58  ;;  %2562 = vadd.xlane.f32.xlu0 %v2561_v25 }
 0xc61   :  { %v4560_v18 = vpop.eup %3595  ;;  %v2530_v7 = vpop.xlane.xlu1 %2529  ;;  %v2292_v4 = vsel %vm674_vm1, %v4557_v62, 0.0 }
 0xc62   :  { %v4564_v21 = vpop.eup %3597  ;;  %v2552_v17 = vmul.f32 1.442695, %v2539_v6  ;;  %v2540_v49 = vsub.f32 %v4502_v16, %v2530_v7  ;;  %2293 = vadd.xlane.f32.xlu1 %v2292_v4  ;;  %3607 = vpow2.f32 %v2550_v40  ;;  %v2558_v47 = vsel %vm674_vm1, %v4560_v18, 0.0 }
 0xc63   :  { %v2533_v33 = vpop.xlane.xlu0 %2532  ;;  %v2295_v24 = vsel %vm674_vm1, %v4564_v21, 0.0 }
 0xc64   :  { %3609 = vpow2.f32 %v2552_v17  ;;  %v2554_v52 = vmul.f32 1.442695, %v2540_v49  ;;  %v2541_v22 = vsub.f32 %v4508_v36, %v2533_v33  ;;  %2296 = vadd.xlane.f32.xlu0 %v2295_v24  ;;  %v4570_v14 = vpop.eup %3599 }
 0xc65   :  { %v2564_v36 = vsel %vm674_vm1, %v4570_v14, 0.0 }
 0xc66   :  { %v4574_v48 = vpop.eup %3601  ;;  %v2556_v38 = vmul.f32 1.442695, %v2541_v22  ;;  %2559 = vadd.xlane.f32.xlu1 %v2558_v47  ;;  %3611 = vpow2.f32 %v2554_v52 }
 0xc67   :  { %v2567_v16 = vsel %vm674_vm1, %v4574_v48, 0.0 }
 0xc68   :  { %3613 = vpow2.f32 %v2556_v38  ;;  %2568 = vadd.xlane.f32.xlu0 %v2567_v16  ;;  %v4578_v50 = vpop.eup %3603 }
 0xc69   :  { %v2298_v12 = vsel %vm674_vm1, %v4578_v50, 0.0 }
 0xc6a   :  { %v4582_v2 = vpop.eup %3605  ;;  %2565 = vadd.xlane.f32.xlu1 %v2564_v36 }
 0xc6b   :  { %v2301_v23 = vsel %vm674_vm1, %v4582_v2, 0.0 }
 0xc6c   :  { %2302 = vadd.xlane.f32.xlu0 %v2301_v23  ;;  %v4586_v37 = vpop.eup %3607 }
 0xc6d   :  { %v2570_v51 = vsel %vm674_vm1, %v4586_v37, 0.0 }
 0xc6e   :  { %v4590_v28 = vpop.eup %3609  ;;  %2299 = vadd.xlane.f32.xlu1 %v2298_v12 }
 0xc6f   :  { %v2573_v0 = vsel %vm674_vm1, %v4590_v28, 0.0 }
 0xc70   :  { %2574 = vadd.xlane.f32.xlu0 %v2573_v0  ;;  %v4594_v8 = vpop.eup %3611 }
 0xc71   :  { %v2576_v32 = vsel %vm674_vm1, %v4594_v8, 0.0 }
 0xc72   :  { %v4598_v44 = vpop.eup %3613  ;;  %2571 = vadd.xlane.f32.xlu1 %v2570_v51 }
 0xc73   :  { %v2579_v43 = vsel %vm674_vm1, %v4598_v44, 0.0 }
 0xc74   :  { %2580 = vadd.xlane.f32.xlu0 %v2579_v43 }
 0xc76   :  { %2577 = vadd.xlane.f32.xlu1 %v2576_v32 }
 0xc87   :  { %2326 = vrot.lane.b32.xlu1 %v4176_v59, %s3673_s21 }
 0xc8a   :  { %2328 = vrot.lane.b32.xlu0 %v4174_v55, %s3673_s21 }
 0xc8b   :  { %2604 = vrot.lane.b32.xlu1 %v4186_v1, %s3673_s21 }
 0xc8e   :  { %1840 = vrot.lane.b32.xlu0 %v4462_v30, %s3673_s21 }
 0xc8f   :  { %2606 = vrot.lane.b32.xlu1 %v4184_v61, %s3673_s21 }
 0xc92   :  { %1844 = vrot.lane.b32.xlu0 %v4460_v56, %s3673_s21 }
 0xc93   :  { %1842 = vrot.lane.b32.xlu1 %v4466_v41, %s3673_s21 }
 0xc96   :  { %2123 = vrot.lane.b32.xlu0 %v4475_v29, %s3673_s21 }
 0xc97   :  { %1846 = vrot.lane.b32.xlu1 %v4464_v35, %s3673_s21 }
 0xc9a   :  { %2127 = vrot.lane.b32.xlu0 %v4473_v26, %s3673_s21 }
 0xc9b   :  { %2125 = vrot.lane.b32.xlu1 %v4485_v9, %s3673_s21 }
 0xc9f   :  { %2129 = vrot.lane.b32.xlu1 %v4479_v53, %s3673_s21 }
 0xcdb   :  { %v2282_v55 = vpop.xlane.xlu1 %2281 }
 0xcdc   :  { %3615 = vrcp.f32 %v2282_v55 }
 0xcdd   :  { %v2285_v59 = vpop.xlane.xlu0 %2284 }
 0xcde   :  { %3617 = vrcp.f32 %v2285_v59 }
 0xcdf   :  { %v2288_v61 = vpop.xlane.xlu1 %2287 }
 0xce0   :  { %3619 = vrcp.f32 %v2288_v61 }
 0xce3   :  { %v2291_v1 = vpop.xlane.xlu0 %2290 }
 0xce4   :  { %3621 = vrcp.f32 %v2291_v1 }
 0xce6   :  { %v3616_v56 = vpop.eup %3615 }
 0xce7   :  { %v2312_v35 = vmul.f32 %v3616_v56, %v4529_v39 }
 0xce8   :  { %v3618_v30 = vpop.eup %3617 }
 0xce9   :  { %v2313_v41 = vmul.f32 %v3618_v30, %v4533_v46 }
 0xcea   :  { %v3620_v29 = vpop.eup %3619 }
 0xceb   :  { %v2320_v26 = vpack.c.bf16 %v2313_v41, %v2312_v35  ;;  %v2314_v45 = vmul.f32 %v3620_v29, %v4538_v20 }
 0xced   :  { %3346 = vmatprep.subr.msk.bf16.mxu1 %vm674_vm1, %v2320_v26  ;;  %v2563_v9 = vpop.xlane.xlu0 %2562  ;;  %v2337_v53 = vsel %vm674_vm1, %v2320_v26, 0 }
 0xcee   :  { %v3622_v15 = vpop.eup %3621  ;;  %3267 = vmatpush3.bf16.xpose.msra.mxu1 %v2337_v53 }
 0xcef   :  { %v2294_v19 = vpop.xlane.xlu1 %2293  ;;  %v2315_v11 = vmul.f32 %v3622_v15, %v4543_v31 }
 0xcf0   :  { %3623 = vrcp.f32 %v2294_v19 }
 0xcf1   :  { %3625 = vrcp.f32 %v2563_v9  ;;  %v2297_v5 = vpop.xlane.xlu0 %2296  ;;  %v2321_v39 = vpack.c.bf16 %v2315_v11, %v2314_v45 }
 0xcf2   :  { %3627 = vrcp.f32 %v2297_v5 }
 0xcf3   :  { %v2560_v46 = vpop.xlane.xlu1 %2559  ;;  %3347 = vmatprep.subr.msk.bf16.mxu1 %vm674_vm1, %v2321_v39  ;;  %v2340_v57 = vsel %vm674_vm1, %v2321_v39, 0 }
 0xcf4   :  { %3629 = vrcp.f32 %v2560_v46 }
 0xcf5   :  { %v2569_v10 = vpop.xlane.xlu0 %2568 }
 0xcf6   :  { %3631 = vrcp.f32 %v2569_v10  ;;  %3269 = vmatpush3.bf16.xpose.msra.mxu1 %v2340_v57 }
 0xcf7   :  { %v2566_v54 = vpop.xlane.xlu1 %2565 }
 0xcf8   :  { %3633 = vrcp.f32 %v2566_v54 }
 0xcf9   :  { %v2303_v13 = vpop.xlane.xlu0 %2302 }
 0xcfa   :  { %v3624_v20 = vpop.eup %3623  ;;  %3635 = vrcp.f32 %v2303_v13 }
 0xcfb   :  { %v3626_v31 = vpop.eup %3625  ;;  %v2300_v60 = vpop.xlane.xlu1 %2299  ;;  %v2316_v27 = vmul.f32 %v3624_v20, %v4557_v62 }
 0xcfc   :  { %v3628_v42 = vpop.eup %3627  ;;  %3637 = vrcp.f32 %v2300_v60  ;;  %v2591_v7 = vmul.f32 %v3626_v31, %v4552_v63 }
 0xcfd   :  { %v2575_v34 = vpop.xlane.xlu0 %2574  ;;  %v2317_v3 = vmul.f32 %v3628_v42, %v4564_v21 }
 0xcfe   :  { %v3630_v58 = vpop.eup %3629  ;;  %3639 = vrcp.f32 %v2575_v34 }
 0xcff   :  { %v2572_v25 = vpop.xlane.xlu1 %2571  ;;  %v2322_v40 = vpack.c.bf16 %v2317_v3, %v2316_v27  ;;  %v2590_v6 = vmul.f32 %v3630_v58, %v4560_v18 }
 0xd00   :  { %v3632_v4 = vpop.eup %3631  ;;  %3641 = vrcp.f32 %v2572_v25 }
 0xd01   :  { %3348 = vmatprep.subr.msk.bf16.mxu1 %vm674_vm1, %v2322_v40  ;;  %v2581_v17 = vpop.xlane.xlu0 %2580  ;;  %v2343_v49 = vsel %vm674_vm1, %v2322_v40, 0  ;;  %v2598_v33 = vpack.c.bf16 %v2591_v7, %v2590_v6  ;;  %v2593_v63 = vmul.f32 %v3632_v4, %v4574_v48  ;;  %v3387_v40 = vld [vmem:[%s4721_s3] sm:$0xff]   ;;  %v2724_v7 = vld [vmem:[%s4722_s4 + $0x8] sm:$0xff]  ;;  %v2725_v4 = vld [vmem:[%s4722_s4 + $0x10] sm:$0xff] }
 0xd02   :  { %v3634_v24 = vpop.eup %3633  ;;  %3271 = vmatpush3.bf16.xpose.msra.mxu1 %v2343_v49  ;;  %3643 = vrcp.f32 %v2581_v17  ;;  %v2723_v6 = vld [vmem:[%s4722_s4] sm:$0xff]  ;;  %v2726_v17 = vld [vmem:[%s4722_s4 + $0x18] sm:$0xff] }
 0xd03   :  { %v2578_v62 = vpop.xlane.xlu1 %2577  ;;  %3350 = vmatprep.subr.msk.bf16.mxu0 %vm674_vm1, %v2598_v33  ;;  %v2615_v21 = vsel %vm674_vm1, %v2598_v33, 0  ;;  %v2592_v18 = vmul.f32 %v3634_v24, %v4570_v14 }
 0xd04   :  { %v3636_v52 = vpop.eup %3635  ;;  %3645 = vrcp.f32 %v2578_v62  ;;  %3291 = vmatpush3.bf16.xpose.msra.mxu0 %v2615_v21 }
 0xd05   :  { %v2329_v22 = vpop.permute.xlu0 %2328  ;;  %v2599_v47 = vpack.c.bf16 %v2593_v63, %v2592_v18  ;;  %v2319_v23 = vmul.f32 %v3636_v52, %v4582_v2 }
 0xd06   :  { %v3638_v38 = vpop.eup %3637 }
 0xd07   :  { %v2327_v16 = vpop.permute.xlu1 %2326  ;;  %3351 = vmatprep.subr.msk.bf16.mxu0 %vm674_vm1, %v2599_v47  ;;  %v2318_v36 = vmul.f32 %v3638_v38, %v4578_v50  ;;  %v2618_v32 = vsel %vm674_vm1, %v2599_v47, 0 }
 0xd08   :  { %v3640_v12 = vpop.eup %3639  ;;  %3274 = vmatprep.mubr.msk.bf16.mxu1 %vm674_vm1, %v2327_v16 }
 0xd09   :  { %v1841_v14 = vpop.permute.xlu0 %1840  ;;  %v2323_v0 = vpack.c.bf16 %v2319_v23, %v2318_v36  ;;  %v2595_v50 = vmul.f32 %v3640_v12, %v4590_v28 }
 0xd0a   :  { %v3642_v48 = vpop.eup %3641  ;;  %1853 = vst.msk [vmem:[#allocation2] sm:$0xff] %vm1852_vm2, %v1841_v14 }
 0xd0b   :  { %v2605_v51 = vpop.permute.xlu1 %2604  ;;  %3349 = vmatprep.subr.msk.bf16.mxu1 %vm674_vm1, %v2323_v0  ;;  %v2346_v43 = vsel %vm674_vm1, %v2323_v0, 0  ;;  %v2594_v55 = vmul.f32 %v3642_v48, %v4586_v37 }
 0xd0c   :  { %3273 = vmatpush3.bf16.xpose.msra.mxu1 %v2346_v43  ;;  %3293 = vmatpush3.bf16.xpose.msra.mxu0 %v2618_v32  ;;  %v3644_v2 = vpop.eup %3643  ;;  %v3388_v32 = vld [vmem:[%s4721_s3 + $0x8] sm:$0xff]   ;;  %s3647_s3 = scalar_lea.vmem %s2818_s15, 512 }
 0xd0d   :  { %3298 = vmatprep.mubr.msk.bf16.mxu0 %vm674_vm1, %v2605_v51  ;;  %v1845_v59 = vpop.permute.xlu0 %1844  ;;  %v2600_v61 = vpack.c.bf16 %v2595_v50, %v2594_v55  ;;  %v2597_v37 = vmul.f32 %v3644_v2, %v4598_v44  ;;  %p3648_p0 = scmp.ne.s32.totalorder %s2818_s15, %s3647_s3  ;;  %p3653_p2 = scmp.lt.s32.totalorder %s3647_s3, %s3647_s3 }
 0xd0e   :  { %v3646_v1 = vpop.eup %3645  ;;  %1855 = vst.msk [vmem:[#allocation2 + $0x10] sm:$0xff] %vm1852_vm2, %v1845_v59 }
 0xd0f   :  { %v2607_v56 = vpop.permute.xlu1 %2606  ;;  %3352 = vmatprep.subr.msk.bf16.mxu0 %vm674_vm1, %v2600_v61  ;;  %v2596_v30 = vmul.f32 %v3646_v1, %v4594_v8  ;;  %v2621_v41 = vsel %vm674_vm1, %v2600_v61, 0  ;;  %p3654_p3 = por %p3653_p2, %p3652_p1 }
 0xd11   :  { %v2124_v35 = vpop.permute.xlu0 %2123  ;;  %v2601_v26 = vpack.c.bf16 %v2597_v37, %v2596_v30  ;;  %v2699_v53 = vld [vmem:[#allocation2] sm:$0xff]  ;;  %p3655_p4 = pnand %p3654_p3, %p3648_p0 }
 0xd12   :  { %2135 = vst.msk [vmem:[#allocation2 + $0x20] sm:$0xff] %vm1852_vm2, %v2124_v35 }
 0xd13   :  { %v1843_v28 = vpop.permute.xlu1 %1842  ;;  %3275 = vmatmul.mubr.msk.bf16.vlgmr.msra.gmra.mrb[60].mxu1 %vm674_vm1, %v2329_v22  ;;  %v2624_v9 = vsel %vm674_vm1, %v2601_v26, 0 }
 0xd14   :  { %1854 = vst.msk [vmem:[#allocation2 + $0x8] sm:$0xff] %vm1852_vm2, %v1843_v28  ;;  %3295 = vmatpush3.bf16.xpose.msra.mxu0 %v2621_v41  ;;  %3318 = vmatprep.mubr.bf16.mxu1 %v3387_v40 }
 0xd15   :  { %3353 = vmatprep.subr.msk.bf16.mxu0 %vm674_vm1, %v2601_v26  ;;  %v2128_v29 = vpop.permute.xlu0 %2127  ;;  %v2701_v11 = vld [vmem:[#allocation2 + $0x10] sm:$0xff] }
 0xd16   :  { %2137 = vst.msk [vmem:[#allocation2 + $0x30] sm:$0xff] %vm1852_vm2, %v2128_v29 }
 0xd17   :  { %v1847_v8 = vpop.permute.xlu1 %1846 }
 0xd18   :  { %1856 = vst.msk [vmem:[#allocation2 + $0x18] sm:$0xff] %vm1852_vm2, %v1847_v8 }
 0xd19   :  { %v2703_v46 = vld [vmem:[#allocation2 + $0x20] sm:$0xff] }
 0xd1b   :  { %v2126_v44 = vpop.permute.xlu1 %2125  ;;  %v2700_v15 = vld [vmem:[#allocation2 + $0x8] sm:$0xff] }
 0xd1c   :  { %2136 = vst.msk [vmem:[#allocation2 + $0x28] sm:$0xff] %vm1852_vm2, %v2126_v44  ;;  %3297 = vmatpush3.bf16.xpose.msra.mxu0 %v2624_v9  ;;  %v2715_v19 = vpack.c.bf16 %v2700_v15, %v2699_v53 }
 0xd1d   :  { %v2705_v54 = vld [vmem:[#allocation2 + $0x30] sm:$0xff] }
 0xd1e   :  { %3302 = vmatprep.subr.bf16.mxu1 %v2715_v19 }
 0xd1f   :  { %v2130_v45 = vpop.permute.xlu1 %2129  ;;  %3303 = vmatpush3.bf16.msra.mxu1 %v2715_v19  ;;  %v2702_v5 = vld [vmem:[#allocation2 + $0x18] sm:$0xff] }
 0xd20   :  { %2138 = vst.msk [vmem:[#allocation2 + $0x38] sm:$0xff] %vm1852_vm2, %v2130_v45  ;;  %v2716_v39 = vpack.c.bf16 %v2702_v5, %v2701_v11 }
 0xd22   :  { %3304 = vmatprep.subr.bf16.mxu1 %v2716_v39 }
 0xd23   :  { %3299 = vmatmul.mubr.msk.bf16.vlgmr.msra.gmra.mrb[76].mxu0 %vm674_vm1, %v2607_v56  ;;  %3305 = vmatpush3.bf16.msra.mxu1 %v2716_v39  ;;  %v2704_v10 = vld [vmem:[#allocation2 + $0x28] sm:$0xff] }
 0xd24   :  { %v2717_v57 = vpack.c.bf16 %v2704_v10, %v2703_v46 }
 0xd26   :  { %3306 = vmatprep.subr.bf16.mxu1 %v2717_v57 }
 0xd27   :  { %3307 = vmatpush3.bf16.msra.mxu1 %v2717_v57  ;;  %v2706_v13 = vld [vmem:[#allocation2 + $0x38] sm:$0xff] }
 0xd28   :  { %v2718_v20 = vpack.c.bf16 %v2706_v13, %v2705_v54 }
 0xd2a   :  { %3308 = vmatprep.subr.bf16.mxu1 %v2718_v20 }
 0xd2b   :  { %3309 = vmatpush3.bf16.msra.mxu1 %v2718_v20 }
 0xde6   :  { %v3276_v31 = vpop.f32.mrb[60].mxu1 }
 0xde7   :  { %v2382_v60 = vpop.f32.mrb[61].mxu1 }
 0xde8   :  { %2401 = vrot.lane.b32.xlu0 %v2382_v60, %s3673_s21  ;;  %v3277_v42 = vpop.f32.mrb[62].mxu1 }
 0xde9   :  { %v2385_v34 = vpop.f32.mrb[63].mxu1 }
 0xdea   :  { %2403 = vrot.lane.b32.xlu1 %v2385_v34, %s3673_s21 }
 0xdec   :  { %2405 = vrot.lane.b32.xlu0 %v3276_v31, %s3673_s21 }
 0xdee   :  { %2407 = vrot.lane.b32.xlu1 %v3277_v42, %s3673_s21 }
 0xdf6   :  { %v3300_v27 = vpop.f32.mrb[76].mxu0 }
 0xdf7   :  { %v2660_v3 = vpop.f32.mrb[77].mxu0 }
 0xdf8   :  { %v3301_v58 = vpop.f32.mrb[78].mxu0  ;;  %2679 = vrot.lane.b32.xlu0 %v2660_v3, %s3673_s21 }
 0xdf9   :  { %v2663_v25 = vpop.f32.mrb[79].mxu0 }
 0xdfa   :  { %2681 = vrot.lane.b32.xlu1 %v2663_v25, %s3673_s21 }
 0xdfc   :  { %2683 = vrot.lane.b32.xlu0 %v3300_v27, %s3673_s21 }
 0xdfe   :  { %2685 = vrot.lane.b32.xlu1 %v3301_v58, %s3673_s21 }
 0xe00   :  { %2729 = vperm.xlu0 %3361, %v2723_v6  }
 0xe02   :  { %2734 = vperm.xlu1 %3362, %v2724_v7  }
 0xe04   :  { %2739 = vperm.xlu0 %3361, %v2725_v4  }
 0xe06   :  { %2744 = vperm.xlu1 %3362, %v2726_v17  }
 0xe5a   :  { %v2402_v49 = vpop.permute.xlu0 %2401 }
 0xe5b   :  { %2413 = vst.msk [vmem:[#allocation2 + $0x40] sm:$0xff] %vm1852_vm2, %v2402_v49 }
 0xe5c   :  { %v2404_v33 = vpop.permute.xlu1 %2403 }
 0xe5d   :  { %2414 = vst.msk [vmem:[#allocation2 + $0x48] sm:$0xff] %vm1852_vm2, %v2404_v33 }
 0xe5e   :  { %v2406_v24 = vpop.permute.xlu0 %2405 }
 0xe5f   :  { %2415 = vst.msk [vmem:[#allocation2 + $0x50] sm:$0xff] %vm1852_vm2, %v2406_v24 }
 0xe60   :  { %v2408_v62 = vpop.permute.xlu1 %2407 }
 0xe61   :  { %2416 = vst.msk [vmem:[#allocation2 + $0x58] sm:$0xff] %vm1852_vm2, %v2408_v62 }
 0xe62   :  { %v2707_v21 = vld [vmem:[#allocation2 + $0x40] sm:$0xff] }
 0xe64   :  { %v2708_v18 = vld [vmem:[#allocation2 + $0x48] sm:$0xff] }
 0xe65   :  { %v2719_v63 = vpack.c.bf16 %v2708_v18, %v2707_v21 }
 0xe66   :  { %v2709_v52 = vld [vmem:[#allocation2 + $0x50] sm:$0xff] }
 0xe67   :  { %3310 = vmatprep.subr.bf16.mxu1 %v2719_v63 }
 0xe68   :  { %3311 = vmatpush3.bf16.msra.mxu1 %v2719_v63  ;;  %v2710_v22 = vld [vmem:[#allocation2 + $0x58] sm:$0xff] }
 0xe69   :  { %v2720_v47 = vpack.c.bf16 %v2710_v22, %v2709_v52 }
 0xe6a   :  { %v2680_v38 = vpop.permute.xlu0 %2679 }
 0xe6b   :  { %2691 = vst.msk [vmem:[#allocation2 + $0x60] sm:$0xff] %vm1852_vm2, %v2680_v38  ;;  %3312 = vmatprep.subr.bf16.mxu1 %v2720_v47 }
 0xe6c   :  { %v2682_v16 = vpop.permute.xlu1 %2681  ;;  %3313 = vmatpush3.bf16.msra.mxu1 %v2720_v47 }
 0xe6d   :  { %2692 = vst.msk [vmem:[#allocation2 + $0x68] sm:$0xff] %vm1852_vm2, %v2682_v16 }
 0xe6e   :  { %v2684_v36 = vpop.permute.xlu0 %2683 }
 0xe6f   :  { %2693 = vst.msk [vmem:[#allocation2 + $0x70] sm:$0xff] %vm1852_vm2, %v2684_v36 }
 0xe70   :  { %v2686_v23 = vpop.permute.xlu1 %2685 }
 0xe71   :  { %2694 = vst.msk [vmem:[#allocation2 + $0x78] sm:$0xff] %vm1852_vm2, %v2686_v23 }
 0xe72   :  { %v2711_v12 = vld [vmem:[#allocation2 + $0x60] sm:$0xff] }
 0xe74   :  { %v2712_v14 = vld [vmem:[#allocation2 + $0x68] sm:$0xff] }
 0xe75   :  { %v2721_v0 = vpack.c.bf16 %v2712_v14, %v2711_v12 }
 0xe76   :  { %v2713_v48 = vld [vmem:[#allocation2 + $0x70] sm:$0xff] }
 0xe77   :  { %3314 = vmatprep.subr.bf16.mxu1 %v2721_v0 }
 0xe78   :  { %3315 = vmatpush3.bf16.msra.mxu1 %v2721_v0  ;;  %v2714_v51 = vld [vmem:[#allocation2 + $0x78] sm:$0xff] }
 0xe79   :  { %v2722_v43 = vpack.c.bf16 %v2714_v51, %v2713_v48 }
 0xe7b   :  { %3316 = vmatprep.subr.bf16.mxu1 %v2722_v43 }
 0xe7c   :  { %3317 = vmatpush3.bf16.msra.mxu1 %v2722_v43 }
 0xe7f   :  { %3319 = vmatmul.mubr.bf16.vlgmr.msra.gmra.mrb[64].mxu1 %v3388_v32  ;;  %v2730_v55 = vpop.permute.xlu0 %2729 }
 0xe81   :  { %v2735_v50 = vpop.permute.xlu1 %2734 }
 0xe83   :  { %v2740_v2 = vpop.permute.xlu0 %2739 }
 0xe85   :  { %v2745_v56 = vpop.permute.xlu1 %2744 }
 0xf52   :  { %v3320_v59 = vpop.f32.mrb[64].mxu1 }
 0xf53   :  { %v2802_v61 = vadd.f32 %v3320_v59, %v2740_v2  ;;  %v2793_v1 = vpop.f32.mrb[65].mxu1 }
 0xf54   :  { %v2794_v30 = vadd.f32 %v2793_v1, %v2730_v55  ;;  %v3321_v35 = vpop.f32.mrb[66].mxu1 }
 0xf55   :  { %2810 = vst [vmem:[#allocation3 + $0x10] sm:$0xff] %v2802_v61  ;;  %v2805_v37 = vadd.f32 %v3321_v35, %v2745_v56  ;;  %v2796_v28 = vpop.f32.mrb[67].mxu1 }
 0xf56   :  { %2808 = vst [vmem:[#allocation3] sm:$0xff] %v2794_v30  ;;  %v2797_v41 = vadd.f32 %v2796_v28, %v2735_v50 }
 0xf57   :  { %2811 = vst [vmem:[#allocation3 + $0x18] sm:$0xff] %v2805_v37 }
 0xf58   :  { %2809 = vst [vmem:[#allocation3 + $0x8] sm:$0xff] %v2797_v41 }
 0xf59   :  { %3658 = shalt.err (!%p3655_p4)
}
 0xf5a   :  { %s3659_s18 = scalar_lea.hbm %s4723_s5, 512 }
 0xf5b   :  { %p3660_p5 = scmp.ne.s32.totalorder %s4723_s5, %s3659_s18  ;;  %p3663_p6 = scmp.lt.u32.totalorder %s3659_s18, %s4723_s5 }
 0xf5d   :  { %p3665_p7 = pnand %p3663_p6, %p3660_p5 }
 0xf5f   :  { %3668 = shalt.err (!%p3665_p7)
}
 0xf60   :  { %s3676_s23 = smov 128   ;;  %s3677_s24 = smov 8  }
 0xf61   :  { %2823 = dma.vmem_to_hbm [thread:$0]  %s2818_s15, 512, %s4723_s5, [#allocation4], %s3676_s23, %s3676_s23, %s3677_s24  }
 0xf62   :  { %3669 = dma.done.wait [#allocation4], 512  }
 0xf63   :  { %3670 = vsyncadd [#allocation4], 4294966784 }
 0xf64   :  { %2827 = vsyncpa [#allocation4], 1 }

</bundles_post_ra>
